<compile_context>
chip_gen: v6e
topology: v6e:2x2x1
jax: 0.10.0
libtpu: 0.0.40
codegen_flags: <defaults>
</compile_context>

<pallas_src>
import functools
import math

import jax
import jax.numpy as jnp
from jax.experimental import pallas as pl
from jax.experimental.pallas import tpu as pltpu


# ------------------------------ Pallas kernel --------------------------------

def _inception_kernel(x_ref, mconv_ref, mpool_ref,
                      wproj_ref, bproj_ref,
                      w3_ref, b3_ref,
                      w331_ref, b331_ref,
                      w332_ref, b332_ref,
                      wp_ref, bp_ref,
                      o_ref, stack_ref,
                      *, shifts, c11, c3r, c33r):
    # x_ref    : (Cin, L)    L = imgs_per_block * H*W, spatial on the lane axis
    # mconv_ref: (9, 1, L)   1.0 where tap neighbor valid, 0.0 in padding
    # mpool_ref: (9, 1, L)   0.0 where valid, -1e30 in padding
    # wproj/bproj: fused [1x1 ; 3x3-reduce ; 3x3x3-reduce] weights (Csum, Cin)
    # w3/w331/w332: 3x3 weights folded tap-major to (Cout, 9*Cred)
    # o_ref    : (Ctot, L)   all four branches concatenated along channels
    # stack_ref: (9*Cred_max, L) VMEM scratch holding the shifted-tap stack
    f32 = jnp.float32
    x = x_ref[...]                                        # (Cin, L)

    # ---- fused 1x1 projections (branch 1 + the two reduce convs) ----------
    proj = jnp.dot(wproj_ref[...], x, preferred_element_type=f32)
    proj = jnp.maximum(proj + bproj_ref[...], 0.0)
    out11 = proj[0:c11, :]
    r3 = proj[c11:c11 + c3r, :]
    r33 = proj[c11 + c3r:c11 + c3r + c33r, :]

    def shift(inp, k):
        # neighbor tap k as a lane roll + boundary zeroing (XLU + VPU work)
        s = shifts[k]
        if s == 0:
            return inp                                    # center tap, valid
        return pltpu.roll(inp, shift=s, axis=1) * mconv_ref[k]

    def conv3x3(w9_ref, b_ref, inp):
        # "same" 3x3 conv folded into ONE matmul: stack the 9 shifted copies
        # of inp along channels in VMEM scratch, contract over K = 9*Cred.
        cred = inp.shape[0]
        for k in range(9):
            stack_ref[k * cred:(k + 1) * cred, :] = shift(inp, k)
        acc = jnp.dot(w9_ref[...], stack_ref[0:9 * cred, :],
                      preferred_element_type=f32)
        return jnp.maximum(acc + b_ref[...], 0.0)

    # branch 2: 1x1 reduce -> 3x3
    out3 = conv3x3(w3_ref, b3_ref, r3)
    # branch 3: 1x1 reduce -> 3x3 -> 3x3 (intermediate stays on-chip)
    out33 = conv3x3(w332_ref, b332_ref, conv3x3(w331_ref, b331_ref, r33))

    # branch 4: 3x3/stride-1/pad-1 max-pool (rolls + -1e30 masks) -> 1x1 conv
    pooled = x                                            # center tap
    for k in range(9):
        if shifts[k] == 0:
            continue
        pooled = jnp.maximum(
            pooled, pltpu.roll(x, shift=shifts[k], axis=1) + mpool_ref[k])
    outp = jnp.dot(wp_ref[...], pooled, preferred_element_type=f32)
    outp = jnp.maximum(outp + bp_ref[...], 0.0)

    # Write each branch into its channel slice of the fused output block.
    c3, c33, cp = out3.shape[0], out33.shape[0], outp.shape[0]
    o_ref[0:c11, :] = out11.astype(o_ref.dtype)
    o_ref[c11:c11 + c3, :] = out3.astype(o_ref.dtype)
    o_ref[c11 + c3:c11 + c3 + c33, :] = out33.astype(o_ref.dtype)
    o_ref[c11 + c3 + c33:c11 + c3 + c33 + cp, :] = outp.astype(o_ref.dtype)


# ------------------------- masks & static roll amounts ------------------------

def _build_masks_and_shifts(H, W, imgs_per_block):
    """Per-tap boundary masks over the folded (imgs*H*W) lane axis and the
    static lane-roll amounts.  Tap order k = (dy+1)*3 + (dx+1) matches the
    cross-correlation weight layout."""
    HW = H * W
    L = imgs_per_block * HW
    j = jnp.arange(HW)
    y, xc = j // W, j % W
    mconv, mpool, shifts = [], [], []
    for dy in (-1, 0, 1):
        for dx in (-1, 0, 1):
            valid = ((y + dy >= 0) & (y + dy < H)
                     & (xc + dx >= 0) & (xc + dx < W))
            mconv.append(jnp.where(valid, 1.0, 0.0))
            mpool.append(jnp.where(valid, 0.0, -1e30))
            shifts.append(int((-(dy * W + dx)) % L))      # out[j] = in[j+delta]
    mconv = jnp.tile(jnp.stack(mconv).astype(jnp.float32)[:, None, :],
                     (1, 1, imgs_per_block))
    mpool = jnp.tile(jnp.stack(mpool).astype(jnp.float32)[:, None, :],
                     (1, 1, imgs_per_block))
    return mconv, mpool, tuple(shifts)                     # (9,1,L),(9,1,L),9 ints


# -------------------------------- wrapper -------------------------------------

@jax.jit
def inception_block1(x_nchw, params):
    N, Cin, H, W = x_nchw.shape
    HW = H * W

    # >= 2 grid steps when possible (keeps both v7x TensorCores busy); any
    # remaining batch folds onto the lane axis, filling the MXU width and
    # amortizing per-step pipeline overhead on v5e/v6e.
    n_blocks = 2 if (N >= 2 and N % 2 == 0) else 1
    imgs_per_block = N // n_blocks
    L = imgs_per_block * HW

    # Fold the batch onto the lane axis: (N,Cin,H,W) -> (Cin, N*HW).
    xf = x_nchw.reshape(N, Cin, HW).transpose(1, 0, 2).reshape(Cin, N * HW)

    mconv, mpool, shifts = _build_masks_and_shifts(H, W, imgs_per_block)

    def t1(w):                   # 1x1 weight (Cin, Cout) -> (Cout, Cin)
        return jnp.transpose(w)

    def col(b):
        return b.reshape(-1, 1)

    def w9(w_hwio):              # (3,3,Cin,Cout) -> (Cout, 9*Cin), tap-major
        kh, kw, ci, co = w_hwio.shape
        return jnp.transpose(w_hwio, (3, 0, 1, 2)).reshape(co, kh * kw * ci)

    # Fuse the three 1x1 convs that read x into one stacked weight / bias.
    wproj = jnp.concatenate(
        [t1(params["w11"]), t1(params["w3r"]), t1(params["w33r"])], axis=0)
    bproj = jnp.concatenate(
        [col(params["b11"]), col(params["b3r"]), col(params["b33r"])], axis=0)
    wp, bp = t1(params["wp"]), col(params["bp"])
    w3, b3 = w9(params["w3"]), col(params["b3"])
    w331, b331 = w9(params["w331"]), col(params["b331"])
    w332, b332 = w9(params["w332"]), col(params["b332"])

    C11 = params["w11"].shape[1]
    C3r = params["w3r"].shape[1]
    C33r = params["w33r"].shape[1]
    C3 = params["w3"].shape[3]
    C33 = params["w332"].shape[3]
    Cp = params["wp"].shape[1]
    Ctot = C11 + C3 + C33 + Cp
    cred_max = max(C3r, C33r, C33)

    def full_spec(a):            # grid-invariant operand, whole array per step
        return pl.BlockSpec(a.shape, lambda i, nd=a.ndim: (0,) * nd)

    kernel = functools.partial(_inception_kernel, shifts=shifts,
                               c11=C11, c3r=C3r, c33r=C33r)

    out = pl.pallas_call(
        kernel,
        out_shape=jax.ShapeDtypeStruct((Ctot, N * HW), x_nchw.dtype),
        grid_spec=pltpu.PrefetchScalarGridSpec(
            num_scalar_prefetch=0,
            grid=(n_blocks,),
            in_specs=[
                pl.BlockSpec((Cin, L), lambda i: (0, i)),
                full_spec(mconv), full_spec(mpool),
                full_spec(wproj), full_spec(bproj),
                full_spec(w3), full_spec(b3),
                full_spec(w331), full_spec(b331),
                full_spec(w332), full_spec(b332),
                full_spec(wp), full_spec(bp),
            ],
            out_specs=pl.BlockSpec((Ctot, L), lambda i: (0, i)),
            scratch_shapes=[pltpu.VMEM((9 * cred_max, L), jnp.float32)],
        ),
        compiler_params=pltpu.CompilerParams(
            dimension_semantics=("parallel",)),
    )(xf, mconv, mpool, wproj, bproj, w3, b3, w331, b331, w332, b332, wp, bp)

    return out.reshape(Ctot, N, HW).transpose(1, 0, 2).reshape(N, Ctot, H, W)


# ----------------------------- parameter setup --------------------------------

def _init_conv(key, cin, cout, kh, kw):
    """PyTorch-style default init (uniform +/- 1/sqrt(fan_in)), deterministic."""
    wk, bk = jax.random.split(key)
    fan_in = cin * kh * kw
    bound = 1.0 / math.sqrt(fan_in)
    # weight stored HWIO; 1x1 weights flattened to (Cin, Cout)
    w = jax.random.uniform(wk, (kh, kw, cin, cout), jnp.float32, -bound, bound)
    b = jax.random.uniform(bk, (cout,), jnp.float32, -bound, bound)
    return w, b


def init_inception_params(key, num_input_ch, num_output_ch):
    keys = jax.random.split(key, 7)
    p = {}
    w, b = _init_conv(keys[0], num_input_ch, num_output_ch[0], 1, 1)
    p["w11"], p["b11"] = w.reshape(num_input_ch, num_output_ch[0]), b
    w, b = _init_conv(keys[1], num_input_ch, num_output_ch[1], 1, 1)
    p["w3r"], p["b3r"] = w.reshape(num_input_ch, num_output_ch[1]), b
    w, b = _init_conv(keys[2], num_input_ch, num_output_ch[3], 1, 1)
    p["w33r"], p["b33r"] = w.reshape(num_input_ch, num_output_ch[3]), b
    w, b = _init_conv(keys[3], num_input_ch, num_output_ch[5], 1, 1)
    p["wp"], p["bp"] = w.reshape(num_input_ch, num_output_ch[5]), b
    p["w3"], p["b3"] = _init_conv(keys[4], num_output_ch[1], num_output_ch[2], 3, 3)
    p["w331"], p["b331"] = _init_conv(keys[5], num_output_ch[3], num_output_ch[4], 3, 3)
    p["w332"], p["b332"] = _init_conv(keys[6], num_output_ch[4], num_output_ch[4], 3, 3)
    return p


# ----------------------------- pure-JAX reference ------------------------------

def _ref_forward(x_nchw, p):
    x = jnp.transpose(x_nchw, (0, 2, 3, 1))
    dn = ("NHWC", "HWIO", "NHWC")

    def conv(xx, w, b, pad):
        y = jax.lax.conv_general_dilated(xx, w, (1, 1), pad, dimension_numbers=dn)
        return jax.nn.relu(y + b)

    def c1(xx, w, b):
        return conv(xx, w.reshape(1, 1, *w.shape), b, "VALID")

    o11 = c1(x, p["w11"], p["b11"])
    o3r = c1(x, p["w3r"], p["b3r"])
    o33r = c1(x, p["w33r"], p["b33r"])
    o3 = conv(o3r, p["w3"], p["b3"], "SAME")
    o33 = conv(conv(o33r, p["w331"], p["b331"], "SAME"), p["w332"], p["b332"], "SAME")
    pooled = jax.lax.reduce_window(x, -jnp.inf, jax.lax.max,
                                   (1, 3, 3, 1), (1, 1, 1, 1),
                                   ((0, 0), (1, 1), (1, 1), (0, 0)))
    op = c1(pooled, p["wp"], p["bp"])
    out = jnp.concatenate([o11, o3, o33, op], axis=-1)
    return jnp.transpose(out, (0, 3, 1, 2))


# ----------------------------------- main --------------------------------------

if __name__ == "__main__":
    key = jax.random.PRNGKey(0)
    xk, pk = jax.random.split(key)

    N, Cin, H, W = 2, 4, 16, 16
    num_output_ch = [4, 4, 8, 4, 8, 4]   # [1x1, 3red, 3, 3_3red, 3_3, pool]

    x = jax.random.normal(xk, (N, Cin, H, W), jnp.float32)
    params = init_inception_params(pk, Cin, num_output_ch)

    out = jax.block_until_ready(inception_block1(x, params))

    ref = _ref_forward(x, params)
    expected_c = (num_output_ch[0] + num_output_ch[2]
                  + num_output_ch[4] + num_output_ch[5])
    assert out.shape == (N, expected_c, H, W), out.shape
    assert jnp.allclose(out, ref, atol=1e-4, rtol=1e-4), \
        float(jnp.max(jnp.abs(out - ref)))

    print("KERNEL_OK")
</pallas_src>

<mosaic_0001>
module attributes {stable_mosaic.version = 11 : i64} {
  func.func @_inception_kernel(%arg0: i32, %arg1: memref<4x256xf32, #tpu.memory_space<vmem>>, %arg2: memref<9x1x256xf32, #tpu.memory_space<vmem>>, %arg3: memref<9x1x256xf32, #tpu.memory_space<vmem>>, %arg4: memref<12x4xf32, #tpu.memory_space<vmem>>, %arg5: memref<12x1xf32, #tpu.memory_space<vmem>>, %arg6: memref<8x36xf32, #tpu.memory_space<vmem>>, %arg7: memref<8x1xf32, #tpu.memory_space<vmem>>, %arg8: memref<8x36xf32, #tpu.memory_space<vmem>>, %arg9: memref<8x1xf32, #tpu.memory_space<vmem>>, %arg10: memref<8x72xf32, #tpu.memory_space<vmem>>, %arg11: memref<8x1xf32, #tpu.memory_space<vmem>>, %arg12: memref<4x4xf32, #tpu.memory_space<vmem>>, %arg13: memref<4x1xf32, #tpu.memory_space<vmem>>, %arg14: memref<24x256xf32, #tpu.memory_space<vmem>>, %arg15: memref<72x256xf32, #tpu.memory_space<vmem>>) attributes {dimension_semantics = [#tpu.dimension_semantics<parallel>], iteration_bounds = array<i64: 2>, scalar_prefetch = 0 : i64, scratch_operands = 1 : i64, tpu.core_type = #tpu.core_type<tc>, window_params = [{transform_indices = @transform_0, window_bounds = array<i64: 4, 256>}, {pipeline_mode = #tpu.pipeline_mode<synchronous>, transform_indices = @transform_1, window_bounds = array<i64: 9, 1, 256>}, {pipeline_mode = #tpu.pipeline_mode<synchronous>, transform_indices = @transform_2, window_bounds = array<i64: 9, 1, 256>}, {pipeline_mode = #tpu.pipeline_mode<synchronous>, transform_indices = @transform_3, window_bounds = array<i64: 12, 4>}, {pipeline_mode = #tpu.pipeline_mode<synchronous>, transform_indices = @transform_4, window_bounds = array<i64: 12, 1>}, {pipeline_mode = #tpu.pipeline_mode<synchronous>, transform_indices = @transform_5, window_bounds = array<i64: 8, 36>}, {pipeline_mode = #tpu.pipeline_mode<synchronous>, transform_indices = @transform_6, window_bounds = array<i64: 8, 1>}, {pipeline_mode = #tpu.pipeline_mode<synchronous>, transform_indices = @transform_7, window_bounds = array<i64: 8, 36>}, {pipeline_mode = #tpu.pipeline_mode<synchronous>, transform_indices = @transform_8, window_bounds = array<i64: 8, 1>}, {pipeline_mode = #tpu.pipeline_mode<synchronous>, transform_indices = @transform_9, window_bounds = array<i64: 8, 72>}, {pipeline_mode = #tpu.pipeline_mode<synchronous>, transform_indices = @transform_10, window_bounds = array<i64: 8, 1>}, {pipeline_mode = #tpu.pipeline_mode<synchronous>, transform_indices = @transform_11, window_bounds = array<i64: 4, 4>}, {pipeline_mode = #tpu.pipeline_mode<synchronous>, transform_indices = @transform_12, window_bounds = array<i64: 4, 1>}, {transform_indices = @transform_13, window_bounds = array<i64: 24, 256>}]} {
    %c0 = arith.constant 0 : index
    %c0_0 = arith.constant 0 : index
    %0 = vector.load %arg1[%c0, %c0_0] : memref<4x256xf32, #tpu.memory_space<vmem>>, vector<4x256xf32>
    %c0_1 = arith.constant 0 : index
    %c0_2 = arith.constant 0 : index
    %1 = vector.load %arg4[%c0_1, %c0_2] : memref<12x4xf32, #tpu.memory_space<vmem>>, vector<12x4xf32>
    %cst = arith.constant dense<0.000000e+00> : vector<12x256xf32>
    %2 = tpu.matmul %1, %0, %cst {dimension_numbers = #tpu.dot_dimension_numbers<[1], [0], [0], [1], [0, 0, 1, 1], [], []>} : vector<12x4xf32>, vector<4x256xf32>, vector<12x256xf32> -> vector<12x256xf32>
    %c0_3 = arith.constant 0 : index
    %c0_4 = arith.constant 0 : index
    %3 = vector.load %arg5[%c0_3, %c0_4] : memref<12x1xf32, #tpu.memory_space<vmem>>, vector<12x1xf32>
    %4 = vector.broadcast %3 : vector<12x1xf32> to vector<12x256xf32>
    %5 = arith.addf %2, %4 : vector<12x256xf32>
    %cst_5 = arith.constant 0.000000e+00 : f32
    %6 = vector.broadcast %cst_5 : f32 to vector<12x256xf32>
    %7 = arith.maximumf %5, %6 : vector<12x256xf32>
    %8 = vector.extract_strided_slice %7 {offsets = [0, 0], sizes = [4, 256], strides = [1, 1]} : vector<12x256xf32> to vector<4x256xf32>
    %9 = vector.extract_strided_slice %7 {offsets = [4, 0], sizes = [4, 256], strides = [1, 1]} : vector<12x256xf32> to vector<4x256xf32>
    %10 = vector.extract_strided_slice %7 {offsets = [8, 0], sizes = [4, 256], strides = [1, 1]} : vector<12x256xf32> to vector<4x256xf32>
    %c17_i32 = arith.constant 17 : i32
    %11 = tpu.dynamic_rotate %9 by %c17_i32 dim 1 : vector<4x256xf32>, i32 -> vector<4x256xf32>
    %c0_6 = arith.constant 0 : index
    %c0_7 = arith.constant 0 : index
    %c0_8 = arith.constant 0 : index
    %12 = vector.load %arg2[%c0_6, %c0_7, %c0_8] : memref<9x1x256xf32, #tpu.memory_space<vmem>>, vector<1x1x256xf32>
    %13 = vector.shape_cast %12 : vector<1x1x256xf32> to vector<1x256xf32>
    %14 = vector.broadcast %13 : vector<1x256xf32> to vector<4x256xf32>
    %15 = arith.mulf %11, %14 : vector<4x256xf32>
    %c0_9 = arith.constant 0 : index
    %c0_10 = arith.constant 0 : index
    %16 = vector.load %arg15[%c0_9, %c0_10] : memref<72x256xf32, #tpu.memory_space<vmem>>, vector<4x256xf32>
    tpu.vector_store %arg15[%c0_9, %c0_10], %15 {strides = array<i32>} : memref<72x256xf32, #tpu.memory_space<vmem>>, vector<4x256xf32>,
    %c16_i32 = arith.constant 16 : i32
    %17 = tpu.dynamic_rotate %9 by %c16_i32 dim 1 : vector<4x256xf32>, i32 -> vector<4x256xf32>
    %c1 = arith.constant 1 : index
    %c0_11 = arith.constant 0 : index
    %c0_12 = arith.constant 0 : index
    %18 = vector.load %arg2[%c1, %c0_11, %c0_12] : memref<9x1x256xf32, #tpu.memory_space<vmem>>, vector<1x1x256xf32>
    %19 = vector.shape_cast %18 : vector<1x1x256xf32> to vector<1x256xf32>
    %20 = vector.broadcast %19 : vector<1x256xf32> to vector<4x256xf32>
    %21 = arith.mulf %17, %20 : vector<4x256xf32>
    %c4 = arith.constant 4 : index
    %c0_13 = arith.constant 0 : index
    %22 = vector.load %arg15[%c4, %c0_13] : memref<72x256xf32, #tpu.memory_space<vmem>>, vector<4x256xf32>
    tpu.vector_store %arg15[%c4, %c0_13], %21 {strides = array<i32>} : memref<72x256xf32, #tpu.memory_space<vmem>>, vector<4x256xf32>,
    %c15_i32 = arith.constant 15 : i32
    %23 = tpu.dynamic_rotate %9 by %c15_i32 dim 1 : vector<4x256xf32>, i32 -> vector<4x256xf32>
    %c2 = arith.constant 2 : index
    %c0_14 = arith.constant 0 : index
    %c0_15 = arith.constant 0 : index
    %24 = vector.load %arg2[%c2, %c0_14, %c0_15] : memref<9x1x256xf32, #tpu.memory_space<vmem>>, vector<1x1x256xf32>
    %25 = vector.shape_cast %24 : vector<1x1x256xf32> to vector<1x256xf32>
    %26 = vector.broadcast %25 : vector<1x256xf32> to vector<4x256xf32>
    %27 = arith.mulf %23, %26 : vector<4x256xf32>
    %c8 = arith.constant 8 : index
    %c0_16 = arith.constant 0 : index
    %28 = vector.load %arg15[%c8, %c0_16] : memref<72x256xf32, #tpu.memory_space<vmem>>, vector<4x256xf32>
    tpu.vector_store %arg15[%c8, %c0_16], %27 {strides = array<i32>} : memref<72x256xf32, #tpu.memory_space<vmem>>, vector<4x256xf32>,
    %c1_i32 = arith.constant 1 : i32
    %29 = tpu.dynamic_rotate %9 by %c1_i32 dim 1 : vector<4x256xf32>, i32 -> vector<4x256xf32>
    %c3 = arith.constant 3 : index
    %c0_17 = arith.constant 0 : index
    %c0_18 = arith.constant 0 : index
    %30 = vector.load %arg2[%c3, %c0_17, %c0_18] : memref<9x1x256xf32, #tpu.memory_space<vmem>>, vector<1x1x256xf32>
    %31 = vector.shape_cast %30 : vector<1x1x256xf32> to vector<1x256xf32>
    %32 = vector.broadcast %31 : vector<1x256xf32> to vector<4x256xf32>
    %33 = arith.mulf %29, %32 : vector<4x256xf32>
    %c12 = arith.constant 12 : index
    %c0_19 = arith.constant 0 : index
    %34 = vector.load %arg15[%c12, %c0_19] : memref<72x256xf32, #tpu.memory_space<vmem>>, vector<4x256xf32>
    tpu.vector_store %arg15[%c12, %c0_19], %33 {strides = array<i32>} : memref<72x256xf32, #tpu.memory_space<vmem>>, vector<4x256xf32>,
    %c16 = arith.constant 16 : index
    %c0_20 = arith.constant 0 : index
    %35 = vector.load %arg15[%c16, %c0_20] : memref<72x256xf32, #tpu.memory_space<vmem>>, vector<4x256xf32>
    tpu.vector_store %arg15[%c16, %c0_20], %9 {strides = array<i32>} : memref<72x256xf32, #tpu.memory_space<vmem>>, vector<4x256xf32>,
    %c255_i32 = arith.constant 255 : i32
    %36 = tpu.dynamic_rotate %9 by %c255_i32 dim 1 : vector<4x256xf32>, i32 -> vector<4x256xf32>
    %c5 = arith.constant 5 : index
    %c0_21 = arith.constant 0 : index
    %c0_22 = arith.constant 0 : index
    %37 = vector.load %arg2[%c5, %c0_21, %c0_22] : memref<9x1x256xf32, #tpu.memory_space<vmem>>, vector<1x1x256xf32>
    %38 = vector.shape_cast %37 : vector<1x1x256xf32> to vector<1x256xf32>
    %39 = vector.broadcast %38 : vector<1x256xf32> to vector<4x256xf32>
    %40 = arith.mulf %36, %39 : vector<4x256xf32>
    %c20 = arith.constant 20 : index
    %c0_23 = arith.constant 0 : index
    %41 = vector.load %arg15[%c20, %c0_23] : memref<72x256xf32, #tpu.memory_space<vmem>>, vector<4x256xf32>
    tpu.vector_store %arg15[%c20, %c0_23], %40 {strides = array<i32>} : memref<72x256xf32, #tpu.memory_space<vmem>>, vector<4x256xf32>,
    %c241_i32 = arith.constant 241 : i32
    %42 = tpu.dynamic_rotate %9 by %c241_i32 dim 1 : vector<4x256xf32>, i32 -> vector<4x256xf32>
    %c6 = arith.constant 6 : index
    %c0_24 = arith.constant 0 : index
    %c0_25 = arith.constant 0 : index
    %43 = vector.load %arg2[%c6, %c0_24, %c0_25] : memref<9x1x256xf32, #tpu.memory_space<vmem>>, vector<1x1x256xf32>
    %44 = vector.shape_cast %43 : vector<1x1x256xf32> to vector<1x256xf32>
    %45 = vector.broadcast %44 : vector<1x256xf32> to vector<4x256xf32>
    %46 = arith.mulf %42, %45 : vector<4x256xf32>
    %c24 = arith.constant 24 : index
    %c0_26 = arith.constant 0 : index
    %47 = vector.load %arg15[%c24, %c0_26] : memref<72x256xf32, #tpu.memory_space<vmem>>, vector<4x256xf32>
    tpu.vector_store %arg15[%c24, %c0_26], %46 {strides = array<i32>} : memref<72x256xf32, #tpu.memory_space<vmem>>, vector<4x256xf32>,
    %c240_i32 = arith.constant 240 : i32
    %48 = tpu.dynamic_rotate %9 by %c240_i32 dim 1 : vector<4x256xf32>, i32 -> vector<4x256xf32>
    %c7 = arith.constant 7 : index
    %c0_27 = arith.constant 0 : index
    %c0_28 = arith.constant 0 : index
    %49 = vector.load %arg2[%c7, %c0_27, %c0_28] : memref<9x1x256xf32, #tpu.memory_space<vmem>>, vector<1x1x256xf32>
    %50 = vector.shape_cast %49 : vector<1x1x256xf32> to vector<1x256xf32>
    %51 = vector.broadcast %50 : vector<1x256xf32> to vector<4x256xf32>
    %52 = arith.mulf %48, %51 : vector<4x256xf32>
    %c28 = arith.constant 28 : index
    %c0_29 = arith.constant 0 : index
    %53 = vector.load %arg15[%c28, %c0_29] : memref<72x256xf32, #tpu.memory_space<vmem>>, vector<4x256xf32>
    tpu.vector_store %arg15[%c28, %c0_29], %52 {strides = array<i32>} : memref<72x256xf32, #tpu.memory_space<vmem>>, vector<4x256xf32>,
    %c239_i32 = arith.constant 239 : i32
    %54 = tpu.dynamic_rotate %9 by %c239_i32 dim 1 : vector<4x256xf32>, i32 -> vector<4x256xf32>
    %c8_30 = arith.constant 8 : index
    %c0_31 = arith.constant 0 : index
    %c0_32 = arith.constant 0 : index
    %55 = vector.load %arg2[%c8_30, %c0_31, %c0_32] : memref<9x1x256xf32, #tpu.memory_space<vmem>>, vector<1x1x256xf32>
    %56 = vector.shape_cast %55 : vector<1x1x256xf32> to vector<1x256xf32>
    %57 = vector.broadcast %56 : vector<1x256xf32> to vector<4x256xf32>
    %58 = arith.mulf %54, %57 : vector<4x256xf32>
    %c32 = arith.constant 32 : index
    %c0_33 = arith.constant 0 : index
    %59 = vector.load %arg15[%c32, %c0_33] : memref<72x256xf32, #tpu.memory_space<vmem>>, vector<4x256xf32>
    tpu.vector_store %arg15[%c32, %c0_33], %58 {strides = array<i32>} : memref<72x256xf32, #tpu.memory_space<vmem>>, vector<4x256xf32>,
    %c0_34 = arith.constant 0 : index
    %c0_35 = arith.constant 0 : index
    %60 = vector.load %arg6[%c0_34, %c0_35] : memref<8x36xf32, #tpu.memory_space<vmem>>, vector<8x36xf32>
    %c0_36 = arith.constant 0 : index
    %c0_37 = arith.constant 0 : index
    %61 = vector.load %arg15[%c0_36, %c0_37] : memref<72x256xf32, #tpu.memory_space<vmem>>, vector<36x256xf32>
    %cst_38 = arith.constant dense<0.000000e+00> : vector<8x256xf32>
    %62 = tpu.matmul %60, %61, %cst_38 {dimension_numbers = #tpu.dot_dimension_numbers<[1], [0], [0], [1], [0, 0, 1, 1], [], []>} : vector<8x36xf32>, vector<36x256xf32>, vector<8x256xf32> -> vector<8x256xf32>
    %c0_39 = arith.constant 0 : index
    %c0_40 = arith.constant 0 : index
    %63 = vector.load %arg7[%c0_39, %c0_40] : memref<8x1xf32, #tpu.memory_space<vmem>>, vector<8x1xf32>
    %64 = vector.broadcast %63 : vector<8x1xf32> to vector<8x256xf32>
    %65 = arith.addf %62, %64 : vector<8x256xf32>
    %cst_41 = arith.constant 0.000000e+00 : f32
    %66 = vector.broadcast %cst_41 : f32 to vector<8x256xf32>
    %67 = arith.maximumf %65, %66 : vector<8x256xf32>
    %c17_i32_42 = arith.constant 17 : i32
    %68 = tpu.dynamic_rotate %10 by %c17_i32_42 dim 1 : vector<4x256xf32>, i32 -> vector<4x256xf32>
    %c0_43 = arith.constant 0 : index
    %c0_44 = arith.constant 0 : index
    %c0_45 = arith.constant 0 : index
    %69 = vector.load %arg2[%c0_43, %c0_44, %c0_45] : memref<9x1x256xf32, #tpu.memory_space<vmem>>, vector<1x1x256xf32>
    %70 = vector.shape_cast %69 : vector<1x1x256xf32> to vector<1x256xf32>
    %71 = vector.broadcast %70 : vector<1x256xf32> to vector<4x256xf32>
    %72 = arith.mulf %68, %71 : vector<4x256xf32>
    %c0_46 = arith.constant 0 : index
    %c0_47 = arith.constant 0 : index
    %73 = vector.load %arg15[%c0_46, %c0_47] : memref<72x256xf32, #tpu.memory_space<vmem>>, vector<4x256xf32>
    tpu.vector_store %arg15[%c0_46, %c0_47], %72 {strides = array<i32>} : memref<72x256xf32, #tpu.memory_space<vmem>>, vector<4x256xf32>,
    %c16_i32_48 = arith.constant 16 : i32
    %74 = tpu.dynamic_rotate %10 by %c16_i32_48 dim 1 : vector<4x256xf32>, i32 -> vector<4x256xf32>
    %c1_49 = arith.constant 1 : index
    %c0_50 = arith.constant 0 : index
    %c0_51 = arith.constant 0 : index
    %75 = vector.load %arg2[%c1_49, %c0_50, %c0_51] : memref<9x1x256xf32, #tpu.memory_space<vmem>>, vector<1x1x256xf32>
    %76 = vector.shape_cast %75 : vector<1x1x256xf32> to vector<1x256xf32>
    %77 = vector.broadcast %76 : vector<1x256xf32> to vector<4x256xf32>
    %78 = arith.mulf %74, %77 : vector<4x256xf32>
    %c4_52 = arith.constant 4 : index
    %c0_53 = arith.constant 0 : index
    %79 = vector.load %arg15[%c4_52, %c0_53] : memref<72x256xf32, #tpu.memory_space<vmem>>, vector<4x256xf32>
    tpu.vector_store %arg15[%c4_52, %c0_53], %78 {strides = array<i32>} : memref<72x256xf32, #tpu.memory_space<vmem>>, vector<4x256xf32>,
    %c15_i32_54 = arith.constant 15 : i32
    %80 = tpu.dynamic_rotate %10 by %c15_i32_54 dim 1 : vector<4x256xf32>, i32 -> vector<4x256xf32>
    %c2_55 = arith.constant 2 : index
    %c0_56 = arith.constant 0 : index
    %c0_57 = arith.constant 0 : index
    %81 = vector.load %arg2[%c2_55, %c0_56, %c0_57] : memref<9x1x256xf32, #tpu.memory_space<vmem>>, vector<1x1x256xf32>
    %82 = vector.shape_cast %81 : vector<1x1x256xf32> to vector<1x256xf32>
    %83 = vector.broadcast %82 : vector<1x256xf32> to vector<4x256xf32>
    %84 = arith.mulf %80, %83 : vector<4x256xf32>
    %c8_58 = arith.constant 8 : index
    %c0_59 = arith.constant 0 : index
    %85 = vector.load %arg15[%c8_58, %c0_59] : memref<72x256xf32, #tpu.memory_space<vmem>>, vector<4x256xf32>
    tpu.vector_store %arg15[%c8_58, %c0_59], %84 {strides = array<i32>} : memref<72x256xf32, #tpu.memory_space<vmem>>, vector<4x256xf32>,
    %c1_i32_60 = arith.constant 1 : i32
    %86 = tpu.dynamic_rotate %10 by %c1_i32_60 dim 1 : vector<4x256xf32>, i32 -> vector<4x256xf32>
    %c3_61 = arith.constant 3 : index
    %c0_62 = arith.constant 0 : index
    %c0_63 = arith.constant 0 : index
    %87 = vector.load %arg2[%c3_61, %c0_62, %c0_63] : memref<9x1x256xf32, #tpu.memory_space<vmem>>, vector<1x1x256xf32>
    %88 = vector.shape_cast %87 : vector<1x1x256xf32> to vector<1x256xf32>
    %89 = vector.broadcast %88 : vector<1x256xf32> to vector<4x256xf32>
    %90 = arith.mulf %86, %89 : vector<4x256xf32>
    %c12_64 = arith.constant 12 : index
    %c0_65 = arith.constant 0 : index
    %91 = vector.load %arg15[%c12_64, %c0_65] : memref<72x256xf32, #tpu.memory_space<vmem>>, vector<4x256xf32>
    tpu.vector_store %arg15[%c12_64, %c0_65], %90 {strides = array<i32>} : memref<72x256xf32, #tpu.memory_space<vmem>>, vector<4x256xf32>,
    %c16_66 = arith.constant 16 : index
    %c0_67 = arith.constant 0 : index
    %92 = vector.load %arg15[%c16_66, %c0_67] : memref<72x256xf32, #tpu.memory_space<vmem>>, vector<4x256xf32>
    tpu.vector_store %arg15[%c16_66, %c0_67], %10 {strides = array<i32>} : memref<72x256xf32, #tpu.memory_space<vmem>>, vector<4x256xf32>,
    %c255_i32_68 = arith.constant 255 : i32
    %93 = tpu.dynamic_rotate %10 by %c255_i32_68 dim 1 : vector<4x256xf32>, i32 -> vector<4x256xf32>
    %c5_69 = arith.constant 5 : index
    %c0_70 = arith.constant 0 : index
    %c0_71 = arith.constant 0 : index
    %94 = vector.load %arg2[%c5_69, %c0_70, %c0_71] : memref<9x1x256xf32, #tpu.memory_space<vmem>>, vector<1x1x256xf32>
    %95 = vector.shape_cast %94 : vector<1x1x256xf32> to vector<1x256xf32>
    %96 = vector.broadcast %95 : vector<1x256xf32> to vector<4x256xf32>
    %97 = arith.mulf %93, %96 : vector<4x256xf32>
    %c20_72 = arith.constant 20 : index
    %c0_73 = arith.constant 0 : index
    %98 = vector.load %arg15[%c20_72, %c0_73] : memref<72x256xf32, #tpu.memory_space<vmem>>, vector<4x256xf32>
    tpu.vector_store %arg15[%c20_72, %c0_73], %97 {strides = array<i32>} : memref<72x256xf32, #tpu.memory_space<vmem>>, vector<4x256xf32>,
    %c241_i32_74 = arith.constant 241 : i32
    %99 = tpu.dynamic_rotate %10 by %c241_i32_74 dim 1 : vector<4x256xf32>, i32 -> vector<4x256xf32>
    %c6_75 = arith.constant 6 : index
    %c0_76 = arith.constant 0 : index
    %c0_77 = arith.constant 0 : index
    %100 = vector.load %arg2[%c6_75, %c0_76, %c0_77] : memref<9x1x256xf32, #tpu.memory_space<vmem>>, vector<1x1x256xf32>
    %101 = vector.shape_cast %100 : vector<1x1x256xf32> to vector<1x256xf32>
    %102 = vector.broadcast %101 : vector<1x256xf32> to vector<4x256xf32>
    %103 = arith.mulf %99, %102 : vector<4x256xf32>
    %c24_78 = arith.constant 24 : index
    %c0_79 = arith.constant 0 : index
    %104 = vector.load %arg15[%c24_78, %c0_79] : memref<72x256xf32, #tpu.memory_space<vmem>>, vector<4x256xf32>
    tpu.vector_store %arg15[%c24_78, %c0_79], %103 {strides = array<i32>} : memref<72x256xf32, #tpu.memory_space<vmem>>, vector<4x256xf32>,
    %c240_i32_80 = arith.constant 240 : i32
    %105 = tpu.dynamic_rotate %10 by %c240_i32_80 dim 1 : vector<4x256xf32>, i32 -> vector<4x256xf32>
    %c7_81 = arith.constant 7 : index
    %c0_82 = arith.constant 0 : index
    %c0_83 = arith.constant 0 : index
    %106 = vector.load %arg2[%c7_81, %c0_82, %c0_83] : memref<9x1x256xf32, #tpu.memory_space<vmem>>, vector<1x1x256xf32>
    %107 = vector.shape_cast %106 : vector<1x1x256xf32> to vector<1x256xf32>
    %108 = vector.broadcast %107 : vector<1x256xf32> to vector<4x256xf32>
    %109 = arith.mulf %105, %108 : vector<4x256xf32>
    %c28_84 = arith.constant 28 : index
    %c0_85 = arith.constant 0 : index
    %110 = vector.load %arg15[%c28_84, %c0_85] : memref<72x256xf32, #tpu.memory_space<vmem>>, vector<4x256xf32>
    tpu.vector_store %arg15[%c28_84, %c0_85], %109 {strides = array<i32>} : memref<72x256xf32, #tpu.memory_space<vmem>>, vector<4x256xf32>,
    %c239_i32_86 = arith.constant 239 : i32
    %111 = tpu.dynamic_rotate %10 by %c239_i32_86 dim 1 : vector<4x256xf32>, i32 -> vector<4x256xf32>
    %c8_87 = arith.constant 8 : index
    %c0_88 = arith.constant 0 : index
    %c0_89 = arith.constant 0 : index
    %112 = vector.load %arg2[%c8_87, %c0_88, %c0_89] : memref<9x1x256xf32, #tpu.memory_space<vmem>>, vector<1x1x256xf32>
    %113 = vector.shape_cast %112 : vector<1x1x256xf32> to vector<1x256xf32>
    %114 = vector.broadcast %113 : vector<1x256xf32> to vector<4x256xf32>
    %115 = arith.mulf %111, %114 : vector<4x256xf32>
    %c32_90 = arith.constant 32 : index
    %c0_91 = arith.constant 0 : index
    %116 = vector.load %arg15[%c32_90, %c0_91] : memref<72x256xf32, #tpu.memory_space<vmem>>, vector<4x256xf32>
    tpu.vector_store %arg15[%c32_90, %c0_91], %115 {strides = array<i32>} : memref<72x256xf32, #tpu.memory_space<vmem>>, vector<4x256xf32>,
    %c0_92 = arith.constant 0 : index
    %c0_93 = arith.constant 0 : index
    %117 = vector.load %arg8[%c0_92, %c0_93] : memref<8x36xf32, #tpu.memory_space<vmem>>, vector<8x36xf32>
    %c0_94 = arith.constant 0 : index
    %c0_95 = arith.constant 0 : index
    %118 = vector.load %arg15[%c0_94, %c0_95] : memref<72x256xf32, #tpu.memory_space<vmem>>, vector<36x256xf32>
    %cst_96 = arith.constant dense<0.000000e+00> : vector<8x256xf32>
    %119 = tpu.matmul %117, %118, %cst_96 {dimension_numbers = #tpu.dot_dimension_numbers<[1], [0], [0], [1], [0, 0, 1, 1], [], []>} : vector<8x36xf32>, vector<36x256xf32>, vector<8x256xf32> -> vector<8x256xf32>
    %c0_97 = arith.constant 0 : index
    %c0_98 = arith.constant 0 : index
    %120 = vector.load %arg9[%c0_97, %c0_98] : memref<8x1xf32, #tpu.memory_space<vmem>>, vector<8x1xf32>
    %121 = vector.broadcast %120 : vector<8x1xf32> to vector<8x256xf32>
    %122 = arith.addf %119, %121 : vector<8x256xf32>
    %cst_99 = arith.constant 0.000000e+00 : f32
    %123 = vector.broadcast %cst_99 : f32 to vector<8x256xf32>
    %124 = arith.maximumf %122, %123 : vector<8x256xf32>
    %c17_i32_100 = arith.constant 17 : i32
    %125 = tpu.dynamic_rotate %124 by %c17_i32_100 dim 1 : vector<8x256xf32>, i32 -> vector<8x256xf32>
    %c0_101 = arith.constant 0 : index
    %c0_102 = arith.constant 0 : index
    %c0_103 = arith.constant 0 : index
    %126 = vector.load %arg2[%c0_101, %c0_102, %c0_103] : memref<9x1x256xf32, #tpu.memory_space<vmem>>, vector<1x1x256xf32>
    %127 = vector.shape_cast %126 : vector<1x1x256xf32> to vector<1x256xf32>
    %128 = vector.broadcast %127 : vector<1x256xf32> to vector<8x256xf32>
    %129 = arith.mulf %125, %128 : vector<8x256xf32>
    %c0_104 = arith.constant 0 : index
    %c0_105 = arith.constant 0 : index
    %130 = vector.load %arg15[%c0_104, %c0_105] : memref<72x256xf32, #tpu.memory_space<vmem>>, vector<8x256xf32>
    tpu.vector_store %arg15[%c0_104, %c0_105], %129 {strides = array<i32>} : memref<72x256xf32, #tpu.memory_space<vmem>>, vector<8x256xf32>,
    %c16_i32_106 = arith.constant 16 : i32
    %131 = tpu.dynamic_rotate %124 by %c16_i32_106 dim 1 : vector<8x256xf32>, i32 -> vector<8x256xf32>
    %c1_107 = arith.constant 1 : index
    %c0_108 = arith.constant 0 : index
    %c0_109 = arith.constant 0 : index
    %132 = vector.load %arg2[%c1_107, %c0_108, %c0_109] : memref<9x1x256xf32, #tpu.memory_space<vmem>>, vector<1x1x256xf32>
    %133 = vector.shape_cast %132 : vector<1x1x256xf32> to vector<1x256xf32>
    %134 = vector.broadcast %133 : vector<1x256xf32> to vector<8x256xf32>
    %135 = arith.mulf %131, %134 : vector<8x256xf32>
    %c8_110 = arith.constant 8 : index
    %c0_111 = arith.constant 0 : index
    %136 = vector.load %arg15[%c8_110, %c0_111] : memref<72x256xf32, #tpu.memory_space<vmem>>, vector<8x256xf32>
    tpu.vector_store %arg15[%c8_110, %c0_111], %135 {strides = array<i32>} : memref<72x256xf32, #tpu.memory_space<vmem>>, vector<8x256xf32>,
    %c15_i32_112 = arith.constant 15 : i32
    %137 = tpu.dynamic_rotate %124 by %c15_i32_112 dim 1 : vector<8x256xf32>, i32 -> vector<8x256xf32>
    %c2_113 = arith.constant 2 : index
    %c0_114 = arith.constant 0 : index
    %c0_115 = arith.constant 0 : index
    %138 = vector.load %arg2[%c2_113, %c0_114, %c0_115] : memref<9x1x256xf32, #tpu.memory_space<vmem>>, vector<1x1x256xf32>
    %139 = vector.shape_cast %138 : vector<1x1x256xf32> to vector<1x256xf32>
    %140 = vector.broadcast %139 : vector<1x256xf32> to vector<8x256xf32>
    %141 = arith.mulf %137, %140 : vector<8x256xf32>
    %c16_116 = arith.constant 16 : index
    %c0_117 = arith.constant 0 : index
    %142 = vector.load %arg15[%c16_116, %c0_117] : memref<72x256xf32, #tpu.memory_space<vmem>>, vector<8x256xf32>
    tpu.vector_store %arg15[%c16_116, %c0_117], %141 {strides = array<i32>} : memref<72x256xf32, #tpu.memory_space<vmem>>, vector<8x256xf32>,
    %c1_i32_118 = arith.constant 1 : i32
    %143 = tpu.dynamic_rotate %124 by %c1_i32_118 dim 1 : vector<8x256xf32>, i32 -> vector<8x256xf32>
    %c3_119 = arith.constant 3 : index
    %c0_120 = arith.constant 0 : index
    %c0_121 = arith.constant 0 : index
    %144 = vector.load %arg2[%c3_119, %c0_120, %c0_121] : memref<9x1x256xf32, #tpu.memory_space<vmem>>, vector<1x1x256xf32>
    %145 = vector.shape_cast %144 : vector<1x1x256xf32> to vector<1x256xf32>
    %146 = vector.broadcast %145 : vector<1x256xf32> to vector<8x256xf32>
    %147 = arith.mulf %143, %146 : vector<8x256xf32>
    %c24_122 = arith.constant 24 : index
    %c0_123 = arith.constant 0 : index
    %148 = vector.load %arg15[%c24_122, %c0_123] : memref<72x256xf32, #tpu.memory_space<vmem>>, vector<8x256xf32>
    tpu.vector_store %arg15[%c24_122, %c0_123], %147 {strides = array<i32>} : memref<72x256xf32, #tpu.memory_space<vmem>>, vector<8x256xf32>,
    %c32_124 = arith.constant 32 : index
    %c0_125 = arith.constant 0 : index
    %149 = vector.load %arg15[%c32_124, %c0_125] : memref<72x256xf32, #tpu.memory_space<vmem>>, vector<8x256xf32>
    tpu.vector_store %arg15[%c32_124, %c0_125], %124 {strides = array<i32>} : memref<72x256xf32, #tpu.memory_space<vmem>>, vector<8x256xf32>,
    %c255_i32_126 = arith.constant 255 : i32
    %150 = tpu.dynamic_rotate %124 by %c255_i32_126 dim 1 : vector<8x256xf32>, i32 -> vector<8x256xf32>
    %c5_127 = arith.constant 5 : index
    %c0_128 = arith.constant 0 : index
    %c0_129 = arith.constant 0 : index
    %151 = vector.load %arg2[%c5_127, %c0_128, %c0_129] : memref<9x1x256xf32, #tpu.memory_space<vmem>>, vector<1x1x256xf32>
    %152 = vector.shape_cast %151 : vector<1x1x256xf32> to vector<1x256xf32>
    %153 = vector.broadcast %152 : vector<1x256xf32> to vector<8x256xf32>
    %154 = arith.mulf %150, %153 : vector<8x256xf32>
    %c40 = arith.constant 40 : index
    %c0_130 = arith.constant 0 : index
    %155 = vector.load %arg15[%c40, %c0_130] : memref<72x256xf32, #tpu.memory_space<vmem>>, vector<8x256xf32>
    tpu.vector_store %arg15[%c40, %c0_130], %154 {strides = array<i32>} : memref<72x256xf32, #tpu.memory_space<vmem>>, vector<8x256xf32>,
    %c241_i32_131 = arith.constant 241 : i32
    %156 = tpu.dynamic_rotate %124 by %c241_i32_131 dim 1 : vector<8x256xf32>, i32 -> vector<8x256xf32>
    %c6_132 = arith.constant 6 : index
    %c0_133 = arith.constant 0 : index
    %c0_134 = arith.constant 0 : index
    %157 = vector.load %arg2[%c6_132, %c0_133, %c0_134] : memref<9x1x256xf32, #tpu.memory_space<vmem>>, vector<1x1x256xf32>
    %158 = vector.shape_cast %157 : vector<1x1x256xf32> to vector<1x256xf32>
    %159 = vector.broadcast %158 : vector<1x256xf32> to vector<8x256xf32>
    %160 = arith.mulf %156, %159 : vector<8x256xf32>
    %c48 = arith.constant 48 : index
    %c0_135 = arith.constant 0 : index
    %161 = vector.load %arg15[%c48, %c0_135] : memref<72x256xf32, #tpu.memory_space<vmem>>, vector<8x256xf32>
    tpu.vector_store %arg15[%c48, %c0_135], %160 {strides = array<i32>} : memref<72x256xf32, #tpu.memory_space<vmem>>, vector<8x256xf32>,
    %c240_i32_136 = arith.constant 240 : i32
    %162 = tpu.dynamic_rotate %124 by %c240_i32_136 dim 1 : vector<8x256xf32>, i32 -> vector<8x256xf32>
    %c7_137 = arith.constant 7 : index
    %c0_138 = arith.constant 0 : index
    %c0_139 = arith.constant 0 : index
    %163 = vector.load %arg2[%c7_137, %c0_138, %c0_139] : memref<9x1x256xf32, #tpu.memory_space<vmem>>, vector<1x1x256xf32>
    %164 = vector.shape_cast %163 : vector<1x1x256xf32> to vector<1x256xf32>
    %165 = vector.broadcast %164 : vector<1x256xf32> to vector<8x256xf32>
    %166 = arith.mulf %162, %165 : vector<8x256xf32>
    %c56 = arith.constant 56 : index
    %c0_140 = arith.constant 0 : index
    %167 = vector.load %arg15[%c56, %c0_140] : memref<72x256xf32, #tpu.memory_space<vmem>>, vector<8x256xf32>
    tpu.vector_store %arg15[%c56, %c0_140], %166 {strides = array<i32>} : memref<72x256xf32, #tpu.memory_space<vmem>>, vector<8x256xf32>,
    %c239_i32_141 = arith.constant 239 : i32
    %168 = tpu.dynamic_rotate %124 by %c239_i32_141 dim 1 : vector<8x256xf32>, i32 -> vector<8x256xf32>
    %c8_142 = arith.constant 8 : index
    %c0_143 = arith.constant 0 : index
    %c0_144 = arith.constant 0 : index
    %169 = vector.load %arg2[%c8_142, %c0_143, %c0_144] : memref<9x1x256xf32, #tpu.memory_space<vmem>>, vector<1x1x256xf32>
    %170 = vector.shape_cast %169 : vector<1x1x256xf32> to vector<1x256xf32>
    %171 = vector.broadcast %170 : vector<1x256xf32> to vector<8x256xf32>
    %172 = arith.mulf %168, %171 : vector<8x256xf32>
    %c64 = arith.constant 64 : index
    %c0_145 = arith.constant 0 : index
    %173 = vector.load %arg15[%c64, %c0_145] : memref<72x256xf32, #tpu.memory_space<vmem>>, vector<8x256xf32>
    tpu.vector_store %arg15[%c64, %c0_145], %172 {strides = array<i32>} : memref<72x256xf32, #tpu.memory_space<vmem>>, vector<8x256xf32>,
    %c0_146 = arith.constant 0 : index
    %c0_147 = arith.constant 0 : index
    %174 = vector.load %arg10[%c0_146, %c0_147] : memref<8x72xf32, #tpu.memory_space<vmem>>, vector<8x72xf32>
    %c0_148 = arith.constant 0 : index
    %c0_149 = arith.constant 0 : index
    %175 = vector.load %arg15[%c0_148, %c0_149] : memref<72x256xf32, #tpu.memory_space<vmem>>, vector<72x256xf32>
    %cst_150 = arith.constant dense<0.000000e+00> : vector<8x256xf32>
    %176 = tpu.matmul %174, %175, %cst_150 {dimension_numbers = #tpu.dot_dimension_numbers<[1], [0], [0], [1], [0, 0, 1, 1], [], []>} : vector<8x72xf32>, vector<72x256xf32>, vector<8x256xf32> -> vector<8x256xf32>
    %c0_151 = arith.constant 0 : index
    %c0_152 = arith.constant 0 : index
    %177 = vector.load %arg11[%c0_151, %c0_152] : memref<8x1xf32, #tpu.memory_space<vmem>>, vector<8x1xf32>
    %178 = vector.broadcast %177 : vector<8x1xf32> to vector<8x256xf32>
    %179 = arith.addf %176, %178 : vector<8x256xf32>
    %cst_153 = arith.constant 0.000000e+00 : f32
    %180 = vector.broadcast %cst_153 : f32 to vector<8x256xf32>
    %181 = arith.maximumf %179, %180 : vector<8x256xf32>
    %c17_i32_154 = arith.constant 17 : i32
    %182 = tpu.dynamic_rotate %0 by %c17_i32_154 dim 1 : vector<4x256xf32>, i32 -> vector<4x256xf32>
    %c0_155 = arith.constant 0 : index
    %c0_156 = arith.constant 0 : index
    %c0_157 = arith.constant 0 : index
    %183 = vector.load %arg3[%c0_155, %c0_156, %c0_157] : memref<9x1x256xf32, #tpu.memory_space<vmem>>, vector<1x1x256xf32>
    %184 = vector.shape_cast %183 : vector<1x1x256xf32> to vector<1x256xf32>
    %185 = vector.broadcast %184 : vector<1x256xf32> to vector<4x256xf32>
    %186 = arith.addf %182, %185 : vector<4x256xf32>
    %187 = arith.maximumf %0, %186 : vector<4x256xf32>
    %c16_i32_158 = arith.constant 16 : i32
    %188 = tpu.dynamic_rotate %0 by %c16_i32_158 dim 1 : vector<4x256xf32>, i32 -> vector<4x256xf32>
    %c1_159 = arith.constant 1 : index
    %c0_160 = arith.constant 0 : index
    %c0_161 = arith.constant 0 : index
    %189 = vector.load %arg3[%c1_159, %c0_160, %c0_161] : memref<9x1x256xf32, #tpu.memory_space<vmem>>, vector<1x1x256xf32>
    %190 = vector.shape_cast %189 : vector<1x1x256xf32> to vector<1x256xf32>
    %191 = vector.broadcast %190 : vector<1x256xf32> to vector<4x256xf32>
    %192 = arith.addf %188, %191 : vector<4x256xf32>
    %193 = arith.maximumf %187, %192 : vector<4x256xf32>
    %c15_i32_162 = arith.constant 15 : i32
    %194 = tpu.dynamic_rotate %0 by %c15_i32_162 dim 1 : vector<4x256xf32>, i32 -> vector<4x256xf32>
    %c2_163 = arith.constant 2 : index
    %c0_164 = arith.constant 0 : index
    %c0_165 = arith.constant 0 : index
    %195 = vector.load %arg3[%c2_163, %c0_164, %c0_165] : memref<9x1x256xf32, #tpu.memory_space<vmem>>, vector<1x1x256xf32>
    %196 = vector.shape_cast %195 : vector<1x1x256xf32> to vector<1x256xf32>
    %197 = vector.broadcast %196 : vector<1x256xf32> to vector<4x256xf32>
    %198 = arith.addf %194, %197 : vector<4x256xf32>
    %199 = arith.maximumf %193, %198 : vector<4x256xf32>
    %c1_i32_166 = arith.constant 1 : i32
    %200 = tpu.dynamic_rotate %0 by %c1_i32_166 dim 1 : vector<4x256xf32>, i32 -> vector<4x256xf32>
    %c3_167 = arith.constant 3 : index
    %c0_168 = arith.constant 0 : index
    %c0_169 = arith.constant 0 : index
    %201 = vector.load %arg3[%c3_167, %c0_168, %c0_169] : memref<9x1x256xf32, #tpu.memory_space<vmem>>, vector<1x1x256xf32>
    %202 = vector.shape_cast %201 : vector<1x1x256xf32> to vector<1x256xf32>
    %203 = vector.broadcast %202 : vector<1x256xf32> to vector<4x256xf32>
    %204 = arith.addf %200, %203 : vector<4x256xf32>
    %205 = arith.maximumf %199, %204 : vector<4x256xf32>
    %c255_i32_170 = arith.constant 255 : i32
    %206 = tpu.dynamic_rotate %0 by %c255_i32_170 dim 1 : vector<4x256xf32>, i32 -> vector<4x256xf32>
    %c5_171 = arith.constant 5 : index
    %c0_172 = arith.constant 0 : index
    %c0_173 = arith.constant 0 : index
    %207 = vector.load %arg3[%c5_171, %c0_172, %c0_173] : memref<9x1x256xf32, #tpu.memory_space<vmem>>, vector<1x1x256xf32>
    %208 = vector.shape_cast %207 : vector<1x1x256xf32> to vector<1x256xf32>
    %209 = vector.broadcast %208 : vector<1x256xf32> to vector<4x256xf32>
    %210 = arith.addf %206, %209 : vector<4x256xf32>
    %211 = arith.maximumf %205, %210 : vector<4x256xf32>
    %c241_i32_174 = arith.constant 241 : i32
    %212 = tpu.dynamic_rotate %0 by %c241_i32_174 dim 1 : vector<4x256xf32>, i32 -> vector<4x256xf32>
    %c6_175 = arith.constant 6 : index
    %c0_176 = arith.constant 0 : index
    %c0_177 = arith.constant 0 : index
    %213 = vector.load %arg3[%c6_175, %c0_176, %c0_177] : memref<9x1x256xf32, #tpu.memory_space<vmem>>, vector<1x1x256xf32>
    %214 = vector.shape_cast %213 : vector<1x1x256xf32> to vector<1x256xf32>
    %215 = vector.broadcast %214 : vector<1x256xf32> to vector<4x256xf32>
    %216 = arith.addf %212, %215 : vector<4x256xf32>
    %217 = arith.maximumf %211, %216 : vector<4x256xf32>
    %c240_i32_178 = arith.constant 240 : i32
    %218 = tpu.dynamic_rotate %0 by %c240_i32_178 dim 1 : vector<4x256xf32>, i32 -> vector<4x256xf32>
    %c7_179 = arith.constant 7 : index
    %c0_180 = arith.constant 0 : index
    %c0_181 = arith.constant 0 : index
    %219 = vector.load %arg3[%c7_179, %c0_180, %c0_181] : memref<9x1x256xf32, #tpu.memory_space<vmem>>, vector<1x1x256xf32>
    %220 = vector.shape_cast %219 : vector<1x1x256xf32> to vector<1x256xf32>
    %221 = vector.broadcast %220 : vector<1x256xf32> to vector<4x256xf32>
    %222 = arith.addf %218, %221 : vector<4x256xf32>
    %223 = arith.maximumf %217, %222 : vector<4x256xf32>
    %c239_i32_182 = arith.constant 239 : i32
    %224 = tpu.dynamic_rotate %0 by %c239_i32_182 dim 1 : vector<4x256xf32>, i32 -> vector<4x256xf32>
    %c8_183 = arith.constant 8 : index
    %c0_184 = arith.constant 0 : index
    %c0_185 = arith.constant 0 : index
    %225 = vector.load %arg3[%c8_183, %c0_184, %c0_185] : memref<9x1x256xf32, #tpu.memory_space<vmem>>, vector<1x1x256xf32>
    %226 = vector.shape_cast %225 : vector<1x1x256xf32> to vector<1x256xf32>
    %227 = vector.broadcast %226 : vector<1x256xf32> to vector<4x256xf32>
    %228 = arith.addf %224, %227 : vector<4x256xf32>
    %229 = arith.maximumf %223, %228 : vector<4x256xf32>
    %c0_186 = arith.constant 0 : index
    %c0_187 = arith.constant 0 : index
    %230 = vector.load %arg12[%c0_186, %c0_187] : memref<4x4xf32, #tpu.memory_space<vmem>>, vector<4x4xf32>
    %cst_188 = arith.constant dense<0.000000e+00> : vector<4x256xf32>
    %231 = tpu.matmul %230, %229, %cst_188 {dimension_numbers = #tpu.dot_dimension_numbers<[1], [0], [0], [1], [0, 0, 1, 1], [], []>} : vector<4x4xf32>, vector<4x256xf32>, vector<4x256xf32> -> vector<4x256xf32>
    %c0_189 = arith.constant 0 : index
    %c0_190 = arith.constant 0 : index
    %232 = vector.load %arg13[%c0_189, %c0_190] : memref<4x1xf32, #tpu.memory_space<vmem>>, vector<4x1xf32>
    %233 = vector.broadcast %232 : vector<4x1xf32> to vector<4x256xf32>
    %234 = arith.addf %231, %233 : vector<4x256xf32>
    %cst_191 = arith.constant 0.000000e+00 : f32
    %235 = vector.broadcast %cst_191 : f32 to vector<4x256xf32>
    %236 = arith.maximumf %234, %235 : vector<4x256xf32>
    %c0_192 = arith.constant 0 : index
    %c0_193 = arith.constant 0 : index
    %237 = vector.load %arg14[%c0_192, %c0_193] : memref<24x256xf32, #tpu.memory_space<vmem>>, vector<4x256xf32>
    tpu.vector_store %arg14[%c0_192, %c0_193], %8 {strides = array<i32>} : memref<24x256xf32, #tpu.memory_space<vmem>>, vector<4x256xf32>,
    %c4_194 = arith.constant 4 : index
    %c0_195 = arith.constant 0 : index
    %238 = vector.load %arg14[%c4_194, %c0_195] : memref<24x256xf32, #tpu.memory_space<vmem>>, vector<8x256xf32>
    tpu.vector_store %arg14[%c4_194, %c0_195], %67 {strides = array<i32>} : memref<24x256xf32, #tpu.memory_space<vmem>>, vector<8x256xf32>,
    %c12_196 = arith.constant 12 : index
    %c0_197 = arith.constant 0 : index
    %239 = vector.load %arg14[%c12_196, %c0_197] : memref<24x256xf32, #tpu.memory_space<vmem>>, vector<8x256xf32>
    tpu.vector_store %arg14[%c12_196, %c0_197], %181 {strides = array<i32>} : memref<24x256xf32, #tpu.memory_space<vmem>>, vector<8x256xf32>,
    %c20_198 = arith.constant 20 : index
    %c0_199 = arith.constant 0 : index
    %240 = vector.load %arg14[%c20_198, %c0_199] : memref<24x256xf32, #tpu.memory_space<vmem>>, vector<4x256xf32>
    tpu.vector_store %arg14[%c20_198, %c0_199], %236 {strides = array<i32>} : memref<24x256xf32, #tpu.memory_space<vmem>>, vector<4x256xf32>,
    return
  }
  func.func @transform_0(%arg0: i32) -> (i32, i32) {
    %c0_i32 = arith.constant 0 : i32
    %c0_i32_0 = arith.constant 0 : i32
    return %c0_i32, %arg0 : i32, i32
  }
  func.func @transform_1(%arg0: i32) -> (i32, i32, i32) {
    %c0_i32 = arith.constant 0 : i32
    %c0_i32_0 = arith.constant 0 : i32
    %c0_i32_1 = arith.constant 0 : i32
    %c0_i32_2 = arith.constant 0 : i32
    return %c0_i32, %c0_i32_0, %c0_i32_1 : i32, i32, i32
  }
  func.func @transform_2(%arg0: i32) -> (i32, i32, i32) {
    %c0_i32 = arith.constant 0 : i32
    %c0_i32_0 = arith.constant 0 : i32
    %c0_i32_1 = arith.constant 0 : i32
    %c0_i32_2 = arith.constant 0 : i32
    return %c0_i32, %c0_i32_0, %c0_i32_1 : i32, i32, i32
  }
  func.func @transform_3(%arg0: i32) -> (i32, i32) {
    %c0_i32 = arith.constant 0 : i32
    %c0_i32_0 = arith.constant 0 : i32
    %c0_i32_1 = arith.constant 0 : i32
    return %c0_i32, %c0_i32_0 : i32, i32
  }
  func.func @transform_4(%arg0: i32) -> (i32, i32) {
    %c0_i32 = arith.constant 0 : i32
    %c0_i32_0 = arith.constant 0 : i32
    %c0_i32_1 = arith.constant 0 : i32
    return %c0_i32, %c0_i32_0 : i32, i32
  }
  func.func @transform_5(%arg0: i32) -> (i32, i32) {
    %c0_i32 = arith.constant 0 : i32
    %c0_i32_0 = arith.constant 0 : i32
    %c0_i32_1 = arith.constant 0 : i32
    return %c0_i32, %c0_i32_0 : i32, i32
  }
  func.func @transform_6(%arg0: i32) -> (i32, i32) {
    %c0_i32 = arith.constant 0 : i32
    %c0_i32_0 = arith.constant 0 : i32
    %c0_i32_1 = arith.constant 0 : i32
    return %c0_i32, %c0_i32_0 : i32, i32
  }
  func.func @transform_7(%arg0: i32) -> (i32, i32) {
    %c0_i32 = arith.constant 0 : i32
    %c0_i32_0 = arith.constant 0 : i32
    %c0_i32_1 = arith.constant 0 : i32
    return %c0_i32, %c0_i32_0 : i32, i32
  }
  func.func @transform_8(%arg0: i32) -> (i32, i32) {
    %c0_i32 = arith.constant 0 : i32
    %c0_i32_0 = arith.constant 0 : i32
    %c0_i32_1 = arith.constant 0 : i32
    return %c0_i32, %c0_i32_0 : i32, i32
  }
  func.func @transform_9(%arg0: i32) -> (i32, i32) {
    %c0_i32 = arith.constant 0 : i32
    %c0_i32_0 = arith.constant 0 : i32
    %c0_i32_1 = arith.constant 0 : i32
    return %c0_i32, %c0_i32_0 : i32, i32
  }
  func.func @transform_10(%arg0: i32) -> (i32, i32) {
    %c0_i32 = arith.constant 0 : i32
    %c0_i32_0 = arith.constant 0 : i32
    %c0_i32_1 = arith.constant 0 : i32
    return %c0_i32, %c0_i32_0 : i32, i32
  }
  func.func @transform_11(%arg0: i32) -> (i32, i32) {
    %c0_i32 = arith.constant 0 : i32
    %c0_i32_0 = arith.constant 0 : i32
    %c0_i32_1 = arith.constant 0 : i32
    return %c0_i32, %c0_i32_0 : i32, i32
  }
  func.func @transform_12(%arg0: i32) -> (i32, i32) {
    %c0_i32 = arith.constant 0 : i32
    %c0_i32_0 = arith.constant 0 : i32
    %c0_i32_1 = arith.constant 0 : i32
    return %c0_i32, %c0_i32_0 : i32, i32
  }
  func.func @transform_13(%arg0: i32) -> (i32, i32) {
    %c0_i32 = arith.constant 0 : i32
    %c0_i32_0 = arith.constant 0 : i32
    return %c0_i32, %arg0 : i32, i32
  }
}

</mosaic_0001>

<bundles_post_ra>
// kernel: inception_block1.1
= control target key start
LH: loop header
LB: loop body
LE: loop exit
PB: predicated region body
PF: predicated region fallthrough
CT: control target
= control target key end

     0   :  { %s2064_s25 = smov 0   ;;  %s2066_s26 = smov 0   ;;  %s2660_s0 = inlined_call_operand.vmem [shape: f32[4,512], index: 0, kind: input, shape index: {}]   ;;  %s2661_s1 = inlined_call_operand.vmem [shape: f32[9,1,256], index: 1, kind: input, shape index: {}]   ;;  %s2662_s2 = inlined_call_operand.vmem [shape: f32[9,1,256], index: 2, kind: input, shape index: {}]   ;;  %s2663_s3 = inlined_call_operand.vmem [shape: f32[12,4], index: 3, kind: input, shape index: {}]   ;;  %s2664_s4 = inlined_call_operand.vmem [shape: f32[12,1], index: 4, kind: input, shape index: {}]   ;;  %s2665_s5 = inlined_call_operand.vmem [shape: f32[8,36], index: 5, kind: input, shape index: {}]   ;;  %s2666_s6 = inlined_call_operand.vmem [shape: f32[8,1], index: 6, kind: input, shape index: {}]   ;;  %s2667_s7 = inlined_call_operand.vmem [shape: f32[8,36], index: 7, kind: input, shape index: {}]   ;;  %s2668_s8 = inlined_call_operand.vmem [shape: f32[8,1], index: 8, kind: input, shape index: {}]   ;;  %s2669_s9 = inlined_call_operand.vmem [shape: f32[8,72], index: 9, kind: input, shape index: {}]   ;;  %s2670_s10 = inlined_call_operand.vmem [shape: f32[8,1], index: 10, kind: input, shape index: {}]   ;;  %s2671_s11 = inlined_call_operand.vmem [shape: f32[4,4], index: 11, kind: input, shape index: {}]   ;;  %s2672_s12 = inlined_call_operand.vmem [shape: f32[4,1], index: 12, kind: input, shape index: {}]   ;;  %s2673_s13 = inlined_call_operand.vmem [shape: f32[24,512], index: 13, kind: output, shape index: {}]  }
   0x1   :  { %s2068_s27 = smov 0  }
   0x2 LB: > { %s2077_s28 = sadd.s32 4294967295, %s1982_s27   ;;  %s2079_s29 = sadd.s32 1, %s1982_s27   ;;  %s1982_s27 = sphi %s2068_s27, %s2680_s27   ;;  %s1978_s26 = sphi %s2066_s26, %s2679_s26   ;;  %s1974_s25 = sphi %s2064_s25, %s2678_s25  }
   0x3   : > { %s305_s30 = ssub.s32 %s1982_s27, %s2079_s29  ;;  %s308_s14 = sadd.s32 1, %s1978_s26 }
   0x4   : > { %p306_p0 = scmp.eq.s32.totalorder %s305_s30, 0  ;;  %p318_p1 = scmp.ne.s32.totalorder %s1978_s26, %s1974_s25 }
   0x5   : > { %p319_p2 = scmp.eq.s32.totalorder %s2077_s28, 1  ;;  %p1872_p3 = scmp.ge.s32.totalorder %s1982_s27, 1 }
   0x6   : > { %s2087_s15 = scalar_select %p306_p0, %s1978_s26, %s308_s14  }
   0x7   : > { %p2089_p4 = por %p319_p2, %p318_p1  ;;  %p388_p5 = scmp.lt.s32.totalorder %s1982_s27, 3 }
   0x9   : > { %p389_p6 = pnand %p1872_p3, %p388_p5 }
   0xa   : > { %s1873_s17 = sshll.u32 (!%p389_p6), %s2077_s28, 1  ;;  %s428_s19 = sand.u32 (!%p389_p6), 1, %s1974_s25  }
   0xb   : > { %392 = sbr.rel (%p389_p6) target bundleno = 986 (0x3da), region = 72  ;;  %p432_p7 = scmp.lt.s32.totalorder (!%p389_p6), %s1873_s17, 3 }
   0xc   : > { %s1922_s20 = smul.u32 (!%p389_p6), 48, %s428_s19  ;;  %s1987_s25 = smov (!%p389_p6), 112  }
   0xd   : > { %s1988_s23 = smov (!%p389_p6), 127   ;;  %s1989_s24 = smov (!%p389_p6), 113  }
   0xe   : > { %s2126_s21 = scalar_lea.vmem (!%p389_p6), [#allocation3], %s1922_s20  ;;  %s1991_s30 = smov (!%p389_p6), 16  }
   0xf   : > { %s1992_s14 = smov (!%p389_p6), 15  }
  0x10   : > { %v1984_v0 = vmov 0.0   ;;  %v1985_v1 = vmov 0   ;;  %v441_v2 = vld [vmem:[%s2664_s4] sm:$0xff]  ;;  %s2682_s17 = smov (!%p432_p7, %s1873_s17), 3  ;;  %v442_v3 = vld [vmem:[%s2664_s4 + $0x8] sm:$0xf]  ;;  %v558_v25 = vlaneseq }
  0x11   : > { %531 = vmatprep.mubr.f32.mxu0 %v1984_v0  ;;  %1957 = vset.pattern.permute.xlu0 %v1985_v1  ;;  %s1874_s22 = sshll.u32 %s2682_s17, 2  ;;  %vm462_vm0 = vcmask 1043456   ;;  %v439_v6 = vld [vmem:[%s2663_s3] sm:$0xff]  ;;  %vm455_vm1 = vcmask 31744   ;;  %v440_v7 = vld [vmem:[%s2663_s3 + $0x8] sm:$0xf] }
  0x12   : > { %445 = vperm.xlu0 %1957, %v441_v2   ;;  %1958 = vset.pattern.permute.xlu1 %v1985_v1  ;;  %s435_s27 = scalar_lea.vmem %s2660_s0, %s1874_s22  ;;  %s1986_s22 = smov 111   ;;  %v1086_v24 = vld [vmem:[%s2668_s8] sm:$0xff]  ;;  %v566_v26 = vshrl.u32 %v558_v25, 7  ;;  %v2209_v27 = vand.u32 127, %v558_v25  ;;  %v1884_v30 = vld [vmem:[%s2661_s1 + $0xe] sm:$0x3] }
  0x13   : > { %1445 = vmatprep.mubr.f32.mxu1 %v1984_v0  ;;  %v2105_v4 = vld [vmem:[%s435_s27] sm:$0xff]  ;;  %s1990_s27 = smov 1   ;;  %s2674_s17 = smov 17   ;;  %v1885_v35 = vld [vmem:[%s2661_s1 + $0x10] sm:$0x3]  ;;  %vm790_vm10 = vcmask 293888  }
  0x14   : > { %v2109_v5 = vcombine.high %v2105_v4, %v2105_v4  ;;  %v2211_v28 = vsub.s32 0, %v566_v26  ;;  %v2213_v29 = vsub.s32 1, %v566_v26  ;;  %vm723_vm2 = vcmp.lt.s32.totalorder %v2209_v27, 112  ;;  %v1882_v44 = vld [vmem:[%s2661_s1 + $0xa] sm:$0x3]  ;;  %s1921_s19 = sshll.u32 (%p2089_p4), %s2077_s28, 4 }
  0x15   : > { %vm753_vm3 = vcmp.lt.s32.totalorder %v2209_v27, 111  ;;  %vm669_vm4 = vcmp.lt.s32.totalorder %v2209_v27, 127  ;;  %v1883_v55 = vld [vmem:[%s2661_s1 + $0xc] sm:$0x3]  ;;  %vm699_vm5 = vcmp.lt.s32.totalorder %v2209_v27, 113  ;;  %vm637_vm6 = vcmp.lt.s32.totalorder %v2209_v27, 1 }
  0x16   : > { %450 = vperm.xlu0 %1957, %v442_v3   ;;  %1875 = vmatprep.subr.msk.mxu0 %vm462_vm0, %v2109_v5  ;;  %v732_v33 = vrot.slane %v1884_v30, %v2211_v28  ;;  %v736_v34 = vrot.slane %v1884_v30, %v2213_v29  ;;  %v762_v42 = vrot.slane %v1885_v35, %v2211_v28  ;;  %v1881_v1 = vld [vmem:[%s2661_s1 + $0x6] sm:$0x3]  ;;  %vm583_vm7 = vcmp.lt.s32.totalorder %v2209_v27, 16  ;;  %v1880_v30 = vld [vmem:[%s2661_s1 + $0x4] sm:$0x3] }
  0x17   : > { %1876 = vmatpush1.msk.msra.mxu0 %vm462_vm0, %v2105_v4  ;;  %v766_v43 = vrot.slane %v1885_v35, %v2213_v29  ;;  %v678_v53 = vrot.slane %v1882_v44, %v2211_v28  ;;  %v682_v54 = vrot.slane %v1882_v44, %v2213_v29  ;;  %v708_v62 = vrot.slane %v1883_v55, %v2211_v28 }
  0x18   : > { %1877 = vmatmul.mubr.msk.f32.vlgmr.msra.gmra.mxu0 %vm455_vm1, %v439_v6  ;;  %v712_v63 = vrot.slane %v1883_v55, %v2213_v29  ;;  %vm613_vm8 = vcmp.lt.s32.totalorder %v2209_v27, 15  ;;  %vm560_vm9 = vcmp.lt.s32.totalorder %v2209_v27, 17  ;;  %vm1377_vm11 = vcmask 588800  }
  0x19   : > { %537 = vmatprep.mubr.f32.mxu0 %v1984_v0 }
  0x1c   : > { %1878 = vmatmul.mubr.msk.f32.gmra.mxu0 %vm455_vm1, %v440_v7 }
  0x1d   : > { %864 = vmatprep.mubr.f32.mxu0 %v1984_v0 }
  0x8d   : > { %v446_v8 = vpop.permute.xlu0 %445 }
  0x91   : > { %v451_v18 = vpop.permute.xlu0 %450 }
  0xd8   : > { %v533_v9 = vpop.f32.mrf.mxu0 }
  0xd9   : > { %v534_v10 = vadd.f32 %v533_v9, %v446_v8 }
  0xda   : > { %v535_v11 = vpop.f32.mrf.mxu0 }
  0xdb   : > { %v544_v12 = vmax.f32 %v534_v10, 0.0  ;;  %v536_v13 = vadd.f32 %v535_v11, %v446_v8 }
  0xdc   : > { %v539_v17 = vpop.f32.mrf.mxu0 }
  0xdd   : > { %v550_v14 = vrot.slane %v544_v12, 4  ;;  %1751 = vst [vmem:[%s2126_s21] sm:$0xf] %v544_v12  ;;  %v545_v15 = vmax.f32 %v536_v13, 0.0  ;;  %v540_v19 = vadd.f32 %v539_v17, %v451_v18  ;;  %v646_v12 = vrot.slane %v1881_v1, %v2211_v28 }
  0xde   : > { %v541_v21 = vpop.f32.mrf.mxu0  ;;  %v650_v13 = vrot.slane %v1881_v1, %v2213_v29 }
  0xdf   : > { %663 = vst [vmem:[#allocation2 + $0x20] sm:$0xf] %v550_v14  ;;  %v551_v16 = vrot.slane %v545_v15, 4  ;;  %1752 = vst [vmem:[%s2126_s21 + $0x8] sm:$0xf] %v545_v15  ;;  %749 = vrot.lane.b32.xlu0 %v550_v14, %s1986_s22  ;;  %719 = vrot.lane.b32.xlu1 %v550_v14, %s1987_s25  ;;  %v2144_v20 = vmax.f32 %v540_v19, 0.0  ;;  %v542_v22 = vadd.f32 %v541_v21, %v451_v18 }
  0xe1   : > { %664 = vst [vmem:[#allocation2 + $0x8] sm:$0xf] %v551_v16  ;;  %v2152_v23 = vmax.f32 %v542_v22, 0.0 }
  0xe3   : > { %665 = vrot.lane.b32.xlu0 %v550_v14, %s1988_s23  ;;  %721 = vrot.lane.b32.xlu1 %v551_v16, %s1987_s25 }
  0xe7   : > { %695 = vrot.lane.b32.xlu0 %v550_v14, %s1989_s24  ;;  %751 = vrot.lane.b32.xlu1 %v551_v16, %s1986_s22 }
  0xeb   : > { %633 = vrot.lane.b32.xlu0 %v550_v14, %s1990_s27  ;;  %667 = vrot.lane.b32.xlu1 %v551_v16, %s1988_s23 }
  0xef   : > { %579 = vrot.lane.b32.xlu0 %v550_v14, %s1991_s30  ;;  %697 = vrot.lane.b32.xlu1 %v551_v16, %s1989_s24 }
  0xf3   : > { %609 = vrot.lane.b32.xlu0 %v550_v14, %s1992_s14  ;;  %635 = vrot.lane.b32.xlu1 %v551_v16, %s1990_s27 }
  0xf7   : > { %554 = vrot.lane.b32.xlu0 %v550_v14, %s2674_s17  ;;  %581 = vrot.lane.b32.xlu1 %v551_v16, %s1991_s30 }
  0xfb   : > { %1025 = vrot.lane.b32.xlu0 %v2144_v20, %s1987_s25  ;;  %611 = vrot.lane.b32.xlu1 %v551_v16, %s1992_s14 }
  0xff   : > { %1053 = vrot.lane.b32.xlu0 %v2144_v20, %s1986_s22  ;;  %556 = vrot.lane.b32.xlu1 %v551_v16, %s2674_s17  ;;  %v1879_v16 = vld [vmem:[%s2661_s1 + $0x2] sm:$0x3] }
 0x100   : > { %v592_v25 = vrot.slane %v1879_v16, %v2211_v28  ;;  %v596_v26 = vrot.slane %v1879_v16, %v2213_v29 }
 0x103   : > { %975 = vrot.lane.b32.xlu0 %v2144_v20, %s1988_s23  ;;  %1027 = vrot.lane.b32.xlu1 %v2152_v23, %s1987_s25 }
 0x107   : > { %1003 = vrot.lane.b32.xlu0 %v2144_v20, %s1989_s24  ;;  %1055 = vrot.lane.b32.xlu1 %v2152_v23, %s1986_s22 }
 0x10b   : > { %945 = vrot.lane.b32.xlu0 %v2144_v20, %s1990_s27  ;;  %977 = vrot.lane.b32.xlu1 %v2152_v23, %s1988_s23 }
 0x10f   : > { %895 = vrot.lane.b32.xlu0 %v2144_v20, %s1991_s30  ;;  %1005 = vrot.lane.b32.xlu1 %v2152_v23, %s1989_s24 }
 0x113   : > { %923 = vrot.lane.b32.xlu0 %v2144_v20, %s1992_s14  ;;  %947 = vrot.lane.b32.xlu1 %v2152_v23, %s1990_s27 }
 0x117   : > { %873 = vrot.lane.b32.xlu0 %v2144_v20, %s2674_s17  ;;  %897 = vrot.lane.b32.xlu1 %v2152_v23, %s1991_s30 }
 0x11b   : > { %1089 = vperm.xlu0 %1957, %v1086_v24   ;;  %925 = vrot.lane.b32.xlu1 %v2152_v23, %s1992_s14 }
 0x11f   : > { %875 = vrot.lane.b32.xlu1 %v2152_v23, %s2674_s17  ;;  %1457 = vrot.lane.b32.xlu0 %v2109_v5, %s2674_s17 }
 0x123   : > { %1455 = vrot.lane.b32.xlu1 %v2105_v4, %s2674_s17  ;;  %1482 = vrot.lane.b32.xlu0 %v2109_v5, %s1991_s30 }
 0x127   : > { %1480 = vrot.lane.b32.xlu1 %v2105_v4, %s1991_s30  ;;  %1508 = vrot.lane.b32.xlu0 %v2109_v5, %s1992_s14 }
 0x12b   : > { %1506 = vrot.lane.b32.xlu1 %v2105_v4, %s1992_s14  ;;  %1534 = vrot.lane.b32.xlu0 %v2109_v5, %s1990_s27 }
 0x12f   : > { %1532 = vrot.lane.b32.xlu1 %v2105_v4, %s1990_s27  ;;  %1560 = vrot.lane.b32.xlu0 %v2109_v5, %s1988_s23 }
 0x133   : > { %1558 = vrot.lane.b32.xlu1 %v2105_v4, %s1988_s23  ;;  %1586 = vrot.lane.b32.xlu0 %v2109_v5, %s1989_s24 }
 0x137   : > { %1584 = vrot.lane.b32.xlu1 %v2105_v4, %s1989_s24 }
 0x151   : > { %v750_v31 = vpop.permute.xlu0 %749  ;;  %v720_v32 = vpop.permute.xlu1 %719 }
 0x155   : > { %v666_v36 = vpop.permute.xlu0 %665  ;;  %v722_v37 = vpop.permute.xlu1 %721 }
 0x156   : > { %v724_v38 = vsel %vm723_vm2, %v720_v32, %v722_v37  ;;  %v725_v39 = vsel %vm723_vm2, %v722_v37, %v720_v32 }
 0x157   : > { %v739_v40 = vmul.f32 %v732_v33, %v724_v38  ;;  %v740_v41 = vmul.f32 %v736_v34, %v725_v39 }
 0x159   : > { %v743_v45 = vrot.slane %v739_v40, 4  ;;  %v744_v46 = vrot.slane %v740_v41, 4  ;;  %v696_v47 = vpop.permute.xlu0 %695  ;;  %v752_v48 = vpop.permute.xlu1 %751  ;;  %v622_v41 = vrot.slane %v1880_v30, %v2211_v28 }
 0x15a   : > { %v754_v49 = vsel %vm753_vm3, %v750_v31, %v752_v48  ;;  %v755_v50 = vsel %vm753_vm3, %v752_v48, %v750_v31 }
 0x15b   : > { %747 = vst [vmem:[#allocation2 + $0x70] sm:$0xf0] %v743_v45  ;;  %748 = vst [vmem:[#allocation2 + $0x80] sm:$0xf0] %v744_v46  ;;  %v769_v51 = vmul.f32 %v762_v42, %v754_v49  ;;  %v770_v52 = vmul.f32 %v766_v43, %v755_v50  ;;  %v626_v42 = vrot.slane %v1880_v30, %v2213_v29  ;;  %v563_v45 = vld [vmem:[%s2661_s1] sm:$0x3] }
 0x15d   : > { %771 = vst [vmem:[#allocation2 + $0x88] sm:$0xf] %v769_v51  ;;  %772 = vst [vmem:[#allocation2 + $0x40] sm:$0xf] %v770_v52  ;;  %v634_v56 = vpop.permute.xlu0 %633  ;;  %v668_v57 = vpop.permute.xlu1 %667  ;;  %v568_v52 = vrot.slane %v563_v45, %v2211_v28 }
 0x15e   : > { %v670_v58 = vsel %vm669_vm4, %v666_v36, %v668_v57  ;;  %v671_v59 = vsel %vm669_vm4, %v668_v57, %v666_v36 }
 0x15f   : > { %v685_v60 = vmul.f32 %v678_v53, %v670_v58  ;;  %v686_v61 = vmul.f32 %v682_v54, %v671_v59  ;;  %v572_v53 = vrot.slane %v563_v45, %v2213_v29  ;;  %v1894_v54 = vld [vmem:[%s2661_s1 + $0xe] sm:$0x3] }
 0x161   : > { %v689_v2 = vrot.slane %v685_v60, 4  ;;  %v690_v3 = vrot.slane %v686_v61, 4  ;;  %v580_v6 = vpop.permute.xlu0 %579  ;;  %v698_v7 = vpop.permute.xlu1 %697  ;;  %v1036_v61 = vrot.slane %v1894_v54, %v2211_v28 }
 0x162   : > { %v700_v8 = vsel %vm699_vm5, %v696_v47, %v698_v7  ;;  %v701_v9 = vsel %vm699_vm5, %v698_v7, %v696_v47 }
 0x163   : > { %693 = vst [vmem:[#allocation2 + $0x20] sm:$0xf0] %v689_v2  ;;  %694 = vst [vmem:[#allocation2 + $0x8] sm:$0xf0] %v690_v3  ;;  %v715_v10 = vmul.f32 %v708_v62, %v700_v8  ;;  %v716_v11 = vmul.f32 %v712_v63, %v701_v9  ;;  %v1040_v62 = vrot.slane %v1894_v54, %v2213_v29  ;;  %v1895_v63 = vld [vmem:[%s2661_s1 + $0x10] sm:$0x3] }
 0x164   : > { %v783_v14 = vld [vmem:[#allocation2 + $0x40] sm:$0xf]  ;;  %v782_v15 = vld [vmem:[#allocation2 + $0x88] sm:$0xf]  ;;  %v1064_v9 = vrot.slane %v1895_v63, %v2211_v28 }
 0x165   : > { %717 = vst [vmem:[#allocation2 + $0x70] sm:$0xf] %v715_v10  ;;  %718 = vst [vmem:[#allocation2 + $0x80] sm:$0xf] %v716_v11  ;;  %v610_v17 = vpop.permute.xlu0 %609  ;;  %1886 = vmatprep.subr.msk.mxu0 %vm462_vm0, %v783_v14  ;;  %v636_v18 = vpop.permute.xlu1 %635  ;;  %v1068_v10 = vrot.slane %v1895_v63, %v2213_v29 }
 0x166   : > { %v638_v19 = vsel %vm637_vm6, %v634_v56, %v636_v18  ;;  %v639_v21 = vsel %vm637_vm6, %v636_v18, %v634_v56  ;;  %1887 = vmatpush1.msk.msra.mxu0 %vm462_vm0, %v782_v15 }
 0x167   : > { %v653_v22 = vmul.f32 %v646_v12, %v639_v21  ;;  %v654_v24 = vmul.f32 %v650_v13, %v638_v19  ;;  %v1892_v13 = vld [vmem:[%s2661_s1 + $0xa] sm:$0x3] }
 0x169   : > { %v657_v31 = vrot.slane %v653_v22, 4  ;;  %v658_v32 = vrot.slane %v654_v24, 4  ;;  %v555_v33 = vpop.permute.xlu0 %554  ;;  %v582_v34 = vpop.permute.xlu1 %581  ;;  %v986_v24 = vrot.slane %v1892_v13, %v2211_v28 }
 0x16a   : > { %v584_v35 = vsel %vm583_vm7, %v580_v6, %v582_v34  ;;  %v585_v36 = vsel %vm583_vm7, %v582_v34, %v580_v6  ;;  %v779_v37 = vld [vmem:[#allocation2 + $0x8] sm:$0xff]  ;;  %v778_v38 = vld [vmem:[#allocation2 + $0x20] sm:$0xff] }
 0x16b   : > { %661 = vst [vmem:[#allocation2 + $0x78] sm:$0xf0] %v657_v31  ;;  %662 = vst [vmem:[#allocation2 + $0x58] sm:$0xf0] %v658_v32  ;;  %v599_v39 = vmul.f32 %v592_v25, %v585_v36  ;;  %v600_v40 = vmul.f32 %v596_v26, %v584_v35  ;;  %v990_v25 = vrot.slane %v1892_v13, %v2213_v29  ;;  %v1893_v26 = vld [vmem:[%s2661_s1 + $0xc] sm:$0x3] }
 0x16c   : > { %974 = vst [vmem:[#allocation2 + $0x8] sm:$0xf] %v2152_v23  ;;  %973 = vst [vmem:[#allocation2 + $0x20] sm:$0xf] %v2144_v20  ;;  %v781_v43 = vld [vmem:[#allocation2 + $0x80] sm:$0xff]  ;;  %v780_v44 = vld [vmem:[#allocation2 + $0x70] sm:$0xff] }
 0x16d   : > { %v603_v46 = vrot.slane %v599_v39, 4  ;;  %v604_v47 = vrot.slane %v600_v40, 4  ;;  %v1026_v48 = vpop.permute.xlu0 %1025  ;;  %824 = vmatprep.subr.mxu0 %v781_v43  ;;  %v612_v49 = vpop.permute.xlu1 %611  ;;  %v773_v32 = vld [vmem:[%s2665_s5] sm:$0xff]  ;;  %v1014_v39 = vrot.slane %v1893_v26, %v2211_v28  ;;  %v1018_v40 = vrot.slane %v1893_v26, %v2213_v29 }
 0x16e   : > { %v614_v50 = vsel %vm613_vm8, %v610_v17, %v612_v49  ;;  %v615_v51 = vsel %vm613_vm8, %v612_v49, %v610_v17  ;;  %825 = vmatpush1.msra.mxu0 %v780_v44 }
 0x16f   : > { %607 = vst [vmem:[#allocation2] sm:$0xf0] %v603_v46  ;;  %608 = vst [vmem:[#allocation2 + $0x38] sm:$0xf0] %v604_v47  ;;  %v629_v20 = vmul.f32 %v622_v41, %v615_v51  ;;  %v630_v23 = vmul.f32 %v626_v42, %v614_v50  ;;  %826 = vmatprep.subr.mxu0 %v779_v37  ;;  %v1891_v41 = vld [vmem:[%s2661_s1 + $0x6] sm:$0x3] }
 0x170   : > { %827 = vmatpush1.msra.mxu0 %v778_v38  ;;  %v956_v49 = vrot.slane %v1891_v41, %v2211_v28  ;;  %v960_v50 = vrot.slane %v1891_v41, %v2213_v29 }
 0x171   : > { %631 = vst [vmem:[#allocation2 + $0x78] sm:$0xf] %v629_v20  ;;  %632 = vst [vmem:[#allocation2 + $0x58] sm:$0xf] %v630_v23  ;;  %v1054_v55 = vpop.permute.xlu0 %1053  ;;  %v557_v56 = vpop.permute.xlu1 %556  ;;  %v1889_v23 = vld [vmem:[%s2661_s1 + $0x2] sm:$0x3] }
 0x172   : > { %v561_v57 = vsel %vm560_vm9, %v555_v33, %v557_v56  ;;  %v562_v58 = vsel %vm560_vm9, %v557_v56, %v555_v33 }
 0x173   : > { %v575_v59 = vmul.f32 %v568_v52, %v562_v58  ;;  %v576_v60 = vmul.f32 %v572_v53, %v561_v57  ;;  %v906_v58 = vrot.slane %v1889_v23, %v2211_v28 }
 0x175   : > { %577 = vst [vmem:[#allocation2] sm:$0xf] %v575_v59  ;;  %578 = vst [vmem:[#allocation2 + $0x38] sm:$0xf] %v576_v60  ;;  %v976_v1 = vpop.permute.xlu0 %975  ;;  %v1028_v2 = vpop.permute.xlu1 %1027  ;;  %v910_v59 = vrot.slane %v1889_v23, %v2213_v29  ;;  %v1890_v60 = vld [vmem:[%s2661_s1 + $0x4] sm:$0x3] }
 0x176   : > { %v1029_v3 = vsel %vm723_vm2, %v1026_v48, %v1028_v2  ;;  %v1030_v6 = vsel %vm723_vm2, %v1028_v2, %v1026_v48 }
 0x177   : > { %v1043_v7 = vmul.f32 %v1036_v61, %v1029_v3  ;;  %v1044_v8 = vmul.f32 %v1040_v62, %v1030_v6 }
 0x178   : > { %v777_v11 = vld [vmem:[#allocation2 + $0x58] sm:$0xff] }
 0x179   : > { %v776_v12 = vld [vmem:[#allocation2 + $0x78] sm:$0xff]  ;;  %v1047_v14 = vrot.slane %v1043_v7, 4  ;;  %v1048_v15 = vrot.slane %v1044_v8, 4  ;;  %v1004_v16 = vpop.permute.xlu0 %1003  ;;  %v1056_v17 = vpop.permute.xlu1 %1055  ;;  %828 = vmatprep.subr.mxu0 %v777_v11  ;;  %v934_v8 = vrot.slane %v1890_v60, %v2211_v28 }
 0x17a   : > { %v1057_v18 = vsel %vm753_vm3, %v1054_v55, %v1056_v17  ;;  %v1058_v19 = vsel %vm753_vm3, %v1056_v17, %v1054_v55  ;;  %829 = vmatpush1.msra.mxu0 %v776_v12  ;;  %v879_v12 = vld [vmem:[%s2661_s1] sm:$0x3] }
 0x17b   : > { %1051 = vst [vmem:[#allocation2 + $0x70] sm:$0xf0] %v1047_v14  ;;  %1052 = vst [vmem:[#allocation2 + $0x80] sm:$0xf0] %v1048_v15  ;;  %v1071_v21 = vmul.f32 %v1064_v9, %v1057_v18  ;;  %v1072_v22 = vmul.f32 %v1068_v10, %v1058_v19  ;;  %v938_v9 = vrot.slane %v1890_v60, %v2213_v29  ;;  %v1905_v60 = vld [vmem:[%s2661_s1 + $0x10] sm:$0x3] }
 0x17c   : > { %v775_v30 = vld [vmem:[#allocation2 + $0x38] sm:$0xff]  ;;  %v774_v31 = vld [vmem:[#allocation2] sm:$0xff] }
 0x17d   : > { %1073 = vst [vmem:[#allocation2 + $0x88] sm:$0xf] %v1071_v21  ;;  %1074 = vst [vmem:[#allocation2 + $0x40] sm:$0xf] %v1072_v22  ;;  %v978_v33 = vpop.permute.xlu1 %977  ;;  %830 = vmatprep.subr.mxu0 %v775_v30  ;;  %v946_v36 = vpop.permute.xlu0 %945 }
 0x17e   : > { %v979_v34 = vsel %vm669_vm4, %v976_v1, %v978_v33  ;;  %v980_v35 = vsel %vm669_vm4, %v978_v33, %v976_v1  ;;  %831 = vmatpush1.msra.mxu0 %v774_v31 }
 0x17f   : > { %v993_v37 = vmul.f32 %v986_v24, %v979_v34  ;;  %v994_v38 = vmul.f32 %v990_v25, %v980_v35  ;;  %1888 = vmatmul.mubr.msk.f32.vlgmr.msra.gmra.mxu0 %vm790_vm10, %v773_v32  ;;  %v884_v24 = vrot.slane %v879_v12, %v2211_v28  ;;  %v888_v25 = vrot.slane %v879_v12, %v2213_v29 }
 0x180   : > { %1165 = vmatprep.mubr.f32.mxu0 %v1984_v0 }
 0x181   : > { %v997_v42 = vrot.slane %v993_v37, 4  ;;  %v998_v43 = vrot.slane %v994_v38, 4  ;;  %v1006_v44 = vpop.permute.xlu1 %1005  ;;  %v896_v52 = vpop.permute.xlu0 %895 }
 0x182   : > { %v1007_v45 = vsel %vm699_vm5, %v1004_v16, %v1006_v44  ;;  %v1008_v46 = vsel %vm699_vm5, %v1006_v44, %v1004_v16 }
 0x183   : > { %1001 = vst [vmem:[#allocation2 + $0x20] sm:$0xf0] %v997_v42  ;;  %1002 = vst [vmem:[#allocation2 + $0x8] sm:$0xf0] %v998_v43  ;;  %v1021_v47 = vmul.f32 %v1014_v39, %v1007_v45  ;;  %v1022_v48 = vmul.f32 %v1018_v40, %v1008_v46  ;;  %v1075_v39 = vld [vmem:[%s2667_s7] sm:$0xff] }
 0x184   : > { %v1085_v51 = vld [vmem:[#allocation2 + $0x40] sm:$0xf]  ;;  %v1084_v20 = vld [vmem:[#allocation2 + $0x88] sm:$0xf] }
 0x185   : > { %1023 = vst [vmem:[#allocation2 + $0x70] sm:$0xf] %v1021_v47  ;;  %1024 = vst [vmem:[#allocation2 + $0x80] sm:$0xf] %v1022_v48  ;;  %v948_v53 = vpop.permute.xlu1 %947  ;;  %1896 = vmatprep.subr.msk.mxu0 %vm462_vm0, %v1085_v51  ;;  %v924_v3 = vpop.permute.xlu0 %923  ;;  %v1663_v51 = vld [vmem:[%s2672_s12] sm:$0xf] }
 0x186   : > { %v949_v54 = vsel %vm637_vm6, %v946_v36, %v948_v53  ;;  %v950_v55 = vsel %vm637_vm6, %v948_v53, %v946_v36  ;;  %1897 = vmatpush1.msk.msra.mxu0 %vm462_vm0, %v1084_v20 }
 0x187   : > { %v963_v56 = vmul.f32 %v956_v49, %v950_v55  ;;  %v964_v57 = vmul.f32 %v960_v50, %v949_v54  ;;  %v784_v49 = vld [vmem:[%s2666_s6] sm:$0xff] }
 0x188   : > { %v1371_v50 = vld [vmem:[%s2670_s10] sm:$0xff] }
 0x189   : > { %v967_v61 = vrot.slane %v963_v56, 4  ;;  %v968_v62 = vrot.slane %v964_v57, 4  ;;  %v898_v63 = vpop.permute.xlu1 %897  ;;  %v874_v26 = vpop.permute.xlu0 %873 }
 0x18a   : > { %v899_v1 = vsel %vm583_vm7, %v896_v52, %v898_v63  ;;  %v900_v2 = vsel %vm583_vm7, %v898_v63, %v896_v52  ;;  %v1081_v18 = vld [vmem:[#allocation2 + $0x8] sm:$0xff]  ;;  %v1080_v22 = vld [vmem:[#allocation2 + $0x20] sm:$0xff]  ;;  %v1341_v63 = vrot.slane %v1905_v60, %v2211_v28 }
 0x18b   : > { %971 = vst [vmem:[#allocation2 + $0x78] sm:$0xf0] %v967_v61  ;;  %972 = vst [vmem:[#allocation2 + $0x58] sm:$0xf0] %v968_v62  ;;  %v913_v6 = vmul.f32 %v906_v58, %v900_v2  ;;  %v914_v7 = vmul.f32 %v910_v59, %v899_v1  ;;  %v1345_v1 = vrot.slane %v1905_v60, %v2213_v29  ;;  %v1904_v2 = vld [vmem:[%s2661_s1 + $0xe] sm:$0x3] }
 0x18c   : > { %v1083_v10 = vld [vmem:[#allocation2 + $0x80] sm:$0xff]  ;;  %v1082_v11 = vld [vmem:[#allocation2 + $0x70] sm:$0xff]  ;;  %v1319_v12 = vrot.slane %v1904_v2, %v2211_v28 }
 0x18d   : > { %v917_v13 = vrot.slane %v913_v6, 4  ;;  %v918_v14 = vrot.slane %v914_v7, 4  ;;  %v926_v15 = vpop.permute.xlu1 %925  ;;  %1125 = vmatprep.subr.mxu0 %v1083_v10  ;;  %v1461_v6 = vld [vmem:[%s2662_s2] sm:$0x3] }
 0x18e   : > { %v927_v16 = vsel %vm613_vm8, %v924_v3, %v926_v15  ;;  %v928_v17 = vsel %vm613_vm8, %v926_v15, %v924_v3  ;;  %1126 = vmatpush1.msra.mxu0 %v1082_v11  ;;  %v1466_v15 = vrot.slane %v1461_v6, %v2211_v28 }
 0x18f   : > { %921 = vst [vmem:[#allocation2] sm:$0xf0] %v917_v13  ;;  %922 = vst [vmem:[#allocation2 + $0x38] sm:$0xf0] %v918_v14  ;;  %v941_v19 = vmul.f32 %v934_v8, %v928_v17  ;;  %v942_v21 = vmul.f32 %v938_v9, %v927_v16  ;;  %1127 = vmatprep.subr.mxu0 %v1081_v18  ;;  %v1323_v13 = vrot.slane %v1904_v2, %v2213_v29  ;;  %v1903_v14 = vld [vmem:[%s2661_s1 + $0xc] sm:$0x3] }
 0x190   : > { %1128 = vmatpush1.msra.mxu0 %v1080_v22  ;;  %v1470_v16 = vrot.slane %v1461_v6, %v2213_v29 }
 0x191   : > { %943 = vst [vmem:[#allocation2 + $0x78] sm:$0xf] %v941_v19  ;;  %944 = vst [vmem:[#allocation2 + $0x58] sm:$0xf] %v942_v21  ;;  %v876_v30 = vpop.permute.xlu1 %875  ;;  %v1907_v21 = vld [vmem:[%s2662_s2 + $0x2] sm:$0x3] }
 0x192   : > { %v877_v31 = vsel %vm560_vm9, %v874_v26, %v876_v30  ;;  %v878_v32 = vsel %vm560_vm9, %v876_v30, %v874_v26 }
 0x193   : > { %v891_v33 = vmul.f32 %v884_v24, %v878_v32  ;;  %v892_v34 = vmul.f32 %v888_v25, %v877_v31  ;;  %v1297_v31 = vrot.slane %v1903_v14, %v2211_v28  ;;  %v1301_v32 = vrot.slane %v1903_v14, %v2213_v29 }
 0x195   : > { %893 = vst [vmem:[#allocation2] sm:$0xf] %v891_v33  ;;  %894 = vst [vmem:[#allocation2 + $0x38] sm:$0xf] %v892_v34  ;;  %v1456_v20 = vpop.permute.xlu1 %1455  ;;  %v1902_v33 = vld [vmem:[%s2661_s1 + $0xa] sm:$0x3] }
 0x196   : > { %v1090_v42 = vpop.permute.xlu0 %1089 }
 0x198   : > { %v1079_v35 = vld [vmem:[#allocation2 + $0x58] sm:$0xff] }
 0x199   : > { %v1078_v36 = vld [vmem:[#allocation2 + $0x78] sm:$0xff]  ;;  %1129 = vmatprep.subr.mxu0 %v1079_v35  ;;  %v1481_v52 = vpop.permute.xlu1 %1480 }
 0x19a   : > { %1130 = vmatpush1.msra.mxu0 %v1078_v36  ;;  %v1458_v23 = vpop.permute.xlu0 %1457  ;;  %v1492_v36 = vrot.slane %v1907_v21, %v2211_v28 }
 0x19b   : > { %v1459_v18 = vsel %vm560_vm9, %v1456_v20, %v1458_v23  ;;  %v1460_v19 = vsel %vm560_vm9, %v1458_v23, %v1456_v20  ;;  %v1279_v20 = vrot.slane %v1902_v33, %v2213_v29 }
 0x19c   : > { %v1077_v37 = vld [vmem:[#allocation2 + $0x38] sm:$0xff]  ;;  %v1076_v38 = vld [vmem:[#allocation2] sm:$0xff]  ;;  %v1473_v34 = vadd.f32 %v1466_v15, %v1460_v19  ;;  %v1474_v35 = vadd.f32 %v1470_v16, %v1459_v18  ;;  %v1910_v19 = vld [vmem:[%s2662_s2 + $0xa] sm:$0x3] }
 0x19d   : > { %1131 = vmatprep.subr.mxu0 %v1077_v37  ;;  %v2441_v54 = vpop.permute.xlu1 %1506  ;;  %v1496_v37 = vrot.slane %v1907_v21, %v2213_v29 }
 0x19e   : > { %1132 = vmatpush1.msra.mxu0 %v1076_v38  ;;  %v1483_v53 = vpop.permute.xlu0 %1482  ;;  %v1908_v38 = vld [vmem:[%s2662_s2 + $0x4] sm:$0x3] }
 0x19f   : > { %1898 = vmatmul.mubr.msk.f32.vlgmr.msra.gmra.mxu0 %vm790_vm10, %v1075_v39  ;;  %v1518_v23 = vrot.slane %v1908_v38, %v2211_v28 }
 0x1a2   : > { %v2443_v55 = vpop.permute.xlu0 %1508 }
 0x1a3   : > { %v1511_v6 = vsel %vm613_vm8, %v2443_v55, %v2441_v54 }
 0x1a6   : > { %v2447_v56 = vpop.permute.xlu0 %1534 }
 0x1aa   : > { %v2451_v58 = vpop.permute.xlu0 %1560 }
 0x1ae   : > { %v2458_v61 = vpop.permute.xlu0 %1586 }
 0x23f   : > { %v2382_v40 = vpop.f32.mrf.mxu0 }
 0x241   : > { %v2384_v41 = vpop.f32.mrf.mxu0 }
 0x25f   : > { %v1167_v43 = vpop.f32.mrf.mxu0 }
 0x260   : > { %v1168_v44 = vadd.f32 %v1167_v43, %v1090_v42  ;;  %v1485_v43 = vsel %vm583_vm7, %v1483_v53, %v1481_v52 }
 0x261   : > { %v1169_v45 = vpop.f32.mrf.mxu0  ;;  %v1499_v60 = vadd.f32 %v1492_v36, %v1485_v43 }
 0x262   : > { %v2386_v46 = vmax.f32 %v1168_v44, 0.0  ;;  %v1170_v47 = vadd.f32 %v1169_v45, %v1090_v42  ;;  %v1484_v42 = vsel %vm583_vm7, %v1481_v52, %v1483_v53  ;;  %v1901_v52 = vld [vmem:[%s2661_s1 + $0x6] sm:$0x3]  ;;  %v1477_v53 = vcombine.low %v1473_v34, %v1474_v35 }
 0x263   : > { %v1570_v34 = vrot.slane %v1910_v19, %v2211_v28 }
 0x264   : > { %1262 = vst [vmem:[#allocation2 + $0x88] sm:$0xff] %v2386_v46  ;;  %v2389_v48 = vmax.f32 %v1170_v47, 0.0  ;;  %1330 = vrot.lane.b32.xlu1 %v2386_v46, %s1986_s22 }
 0x266   : > { %1263 = vst [vmem:[#allocation2 + $0x40] sm:$0xff] %v2389_v48  ;;  %1332 = vrot.lane.b32.xlu0 %v2389_v48, %s1986_s22 }
 0x268   : > { %1308 = vrot.lane.b32.xlu1 %v2386_v46, %s1987_s25 }
 0x26a   : > { %1310 = vrot.lane.b32.xlu0 %v2389_v48, %s1987_s25 }
 0x26c   : > { %1286 = vrot.lane.b32.xlu1 %v2386_v46, %s1989_s24 }
 0x26e   : > { %1288 = vrot.lane.b32.xlu0 %v2389_v48, %s1989_s24  ;;  %s2677_s24 = smov 17  }
 0x270   : > { %1264 = vrot.lane.b32.xlu1 %v2386_v46, %s1988_s23 }
 0x272   : > { %1266 = vrot.lane.b32.xlu0 %v2389_v48, %s1988_s23 }
 0x274   : > { %1240 = vrot.lane.b32.xlu1 %v2386_v46, %s1990_s27 }
 0x276   : > { %1242 = vrot.lane.b32.xlu0 %v2389_v48, %s1990_s27  ;;  %s1790_s27 = scalar_lea.vmem (%p2089_p4), %s2673_s13, %s1921_s19 }
 0x278   : > { %1218 = vrot.lane.b32.xlu1 %v2386_v46, %s1992_s14 }
 0x27a   : > { %1220 = vrot.lane.b32.xlu0 %v2389_v48, %s1992_s14 }
 0x27c   : > { %1196 = vrot.lane.b32.xlu1 %v2386_v46, %s1991_s30 }
 0x27e   : > { %1198 = vrot.lane.b32.xlu0 %v2389_v48, %s1991_s30 }
 0x280   : > { %1174 = vrot.lane.b32.xlu1 %v2386_v46, %s2677_s24 }
 0x282   : > { %1176 = vrot.lane.b32.xlu0 %v2389_v48, %s2677_s24 }
 0x284   : > { %1610 = vrot.lane.b32.xlu1 %v2105_v4, %s1987_s25 }
 0x286   : > { %1612 = vrot.lane.b32.xlu0 %v2109_v5, %s1987_s25 }
 0x288   : > { %1636 = vrot.lane.b32.xlu1 %v2105_v4, %s1986_s22 }
 0x28a   : > { %1638 = vrot.lane.b32.xlu0 %v2109_v5, %s1986_s22  ;;  %v2445_v5 = vpop.permute.xlu1 %1532 }
 0x28c   : > { %787 = vperm.xlu1 %1958, %v784_v49  }
 0x28e   : > { %1374 = vperm.xlu0 %1957, %v1371_v50   ;;  %v2449_v57 = vpop.permute.xlu1 %1558 }
 0x290   : > { %1666 = vperm.xlu1 %1958, %v1663_v51   ;;  %v1275_v51 = vrot.slane %v1902_v33, %v2211_v28 }
 0x292   : > { %v2453_v59 = vpop.permute.xlu1 %1584 }
 0x2d6   : > { %v1331_v62 = vpop.permute.xlu1 %1330 }
 0x2d8   : > { %v1333_v3 = vpop.permute.xlu0 %1332 }
 0x2d9   : > { %v1334_v7 = vsel %vm753_vm3, %v1331_v62, %v1333_v3  ;;  %v1335_v8 = vsel %vm753_vm3, %v1333_v3, %v1331_v62  ;;  %v1500_v62 = vadd.f32 %v1496_v37, %v1484_v42  ;;  %v1510_v3 = vsel %vm613_vm8, %v2441_v54, %v2443_v55  ;;  %v1900_v54 = vld [vmem:[%s2661_s1 + $0x4] sm:$0x3] }
 0x2da   : > { %v1348_v9 = vmul.f32 %v1341_v63, %v1334_v7  ;;  %v1349_v10 = vmul.f32 %v1345_v1, %v1335_v8  ;;  %v1309_v11 = vpop.permute.xlu1 %1308  ;;  %v1522_v63 = vrot.slane %v1908_v38, %v2213_v29  ;;  %v1909_v1 = vld [vmem:[%s2662_s2 + $0x6] sm:$0x3]  ;;  %v1479_v55 = vmax.f32 %v2105_v4, %v1477_v53 }
 0x2db   : > { %v1544_v14 = vrot.slane %v1909_v1, %v2211_v28  ;;  %v1548_v15 = vrot.slane %v1909_v1, %v2213_v29  ;;  %v1503_v16 = vcombine.low %v1499_v60, %v1500_v62  ;;  %v1233_v33 = vrot.slane %v1900_v54, %v2213_v29 }
 0x2dc   : > { %v1311_v17 = vpop.permute.xlu0 %1310  ;;  %1395 = vmatprep.subr.mxu1 %v1349_v10  ;;  %v1526_v18 = vadd.f32 %v1522_v63, %v1510_v3  ;;  %v1562_v42 = vsel %vm669_vm4, %v2449_v57, %v2451_v58  ;;  %v1588_v63 = vsel %vm699_vm5, %v2453_v59, %v2458_v61  ;;  %v1589_v1 = vsel %vm699_vm5, %v2458_v61, %v2453_v59 }
 0x2dd   : > { %v1312_v22 = vsel %vm723_vm2, %v1309_v11, %v1311_v17  ;;  %v1313_v24 = vsel %vm723_vm2, %v1311_v17, %v1309_v11  ;;  %1396 = vmatpush1.msra.mxu1 %v1348_v9  ;;  %v1525_v17 = vadd.f32 %v1518_v23, %v1511_v6  ;;  %v1505_v35 = vmax.f32 %v1479_v55, %v1503_v16 }
 0x2de   : > { %v1326_v25 = vmul.f32 %v1319_v12, %v1312_v22  ;;  %v1327_v26 = vmul.f32 %v1323_v13, %v1313_v24  ;;  %v1287_v30 = vpop.permute.xlu1 %1286  ;;  %v1251_v12 = vrot.slane %v1901_v52, %v2211_v28  ;;  %v1255_v13 = vrot.slane %v1901_v52, %v2213_v29 }
 0x2df   : > { %v1536_v22 = vsel %vm637_vm6, %v2445_v5, %v2447_v56  ;;  %v1537_v24 = vsel %vm637_vm6, %v2447_v56, %v2445_v5  ;;  %v1574_v5 = vrot.slane %v1910_v19, %v2213_v29  ;;  %v1899_v56 = vld [vmem:[%s2661_s1 + $0x2] sm:$0x3]  ;;  %v1529_v36 = vcombine.low %v1525_v17, %v1526_v18 }
 0x2e0   : > { %v1289_v39 = vpop.permute.xlu0 %1288  ;;  %1397 = vmatprep.subr.mxu1 %v1327_v26  ;;  %v1551_v37 = vadd.f32 %v1544_v14, %v1537_v24  ;;  %v1552_v38 = vadd.f32 %v1548_v15, %v1536_v22  ;;  %v1577_v53 = vadd.f32 %v1570_v34, %v1562_v42  ;;  %v1352_v22 = vld [vmem:[%s2669_s9] sm:$0xff] }
 0x2e1   : > { %v1290_v44 = vsel %vm699_vm5, %v1287_v30, %v1289_v39  ;;  %v1291_v45 = vsel %vm699_vm5, %v1289_v39, %v1287_v30  ;;  %1398 = vmatpush1.msra.mxu1 %v1326_v25  ;;  %v1911_v39 = vld [vmem:[%s2662_s2 + $0xc] sm:$0x3] }
 0x2e2   : > { %v1304_v47 = vmul.f32 %v1297_v31, %v1290_v44  ;;  %v1305_v49 = vmul.f32 %v1301_v32, %v1291_v45  ;;  %v1265_v50 = vpop.permute.xlu1 %1264  ;;  %v1229_v32 = vrot.slane %v1900_v54, %v2211_v28  ;;  %v1600_v23 = vrot.slane %v1911_v39, %v2213_v29 }
 0x2e3   : > { %v1555_v52 = vcombine.low %v1551_v37, %v1552_v38 }
 0x2e4   : > { %v1267_v2 = vpop.permute.xlu0 %1266  ;;  %1399 = vmatprep.subr.mxu1 %v1305_v49  ;;  %v1604_v14 = vadd.f32 %v1600_v23, %v1589_v1 }
 0x2e5   : > { %v1268_v7 = vsel %vm669_vm4, %v1265_v50, %v1267_v2  ;;  %v1269_v8 = vsel %vm669_vm4, %v1267_v2, %v1265_v50  ;;  %1400 = vmatpush1.msra.mxu1 %v1304_v47  ;;  %v1207_v50 = vrot.slane %v1899_v56, %v2211_v28 }
 0x2e6   : > { %v1282_v9 = vmul.f32 %v1275_v51, %v1268_v7  ;;  %v1283_v10 = vmul.f32 %v1279_v20, %v1269_v8  ;;  %v1241_v11 = vpop.permute.xlu1 %1240  ;;  %v1211_v51 = vrot.slane %v1899_v56, %v2213_v29  ;;  %v1596_v20 = vrot.slane %v1911_v39, %v2211_v28 }
 0x2e8   : > { %v1243_v21 = vpop.permute.xlu0 %1242  ;;  %1401 = vmatprep.subr.mxu1 %v1283_v10 }
 0x2e9   : > { %v1244_v4 = vsel %vm637_vm6, %v1241_v11, %v1243_v21  ;;  %v1245_v25 = vsel %vm637_vm6, %v1243_v21, %v1241_v11  ;;  %1402 = vmatpush1.msra.mxu1 %v1282_v9  ;;  %v1912_v11 = vld [vmem:[%s2662_s2 + $0xe] sm:$0x3]  ;;  %v1913_v21 = vld [vmem:[%s2662_s2 + $0x10] sm:$0x3] }
 0x2ea   : > { %v1258_v26 = vmul.f32 %v1251_v12, %v1245_v25  ;;  %v1259_v30 = vmul.f32 %v1255_v13, %v1244_v4  ;;  %v1219_v31 = vpop.permute.xlu1 %1218  ;;  %1403 = vmatprep.subr.mxu1 %v2389_v48  ;;  %v1603_v13 = vadd.f32 %v1596_v20, %v1588_v63  ;;  %v1622_v17 = vrot.slane %v1912_v11, %v2211_v28 }
 0x2eb   : > { %1404 = vmatpush1.msra.mxu1 %v2386_v46  ;;  %v1563_v46 = vsel %vm669_vm4, %v2451_v58, %v2449_v57  ;;  %v1180_v57 = vld [vmem:[%s2661_s1] sm:$0x3]  ;;  %v1531_v58 = vmax.f32 %v1505_v35, %v1529_v36  ;;  %v1626_v18 = vrot.slane %v1912_v11, %v2213_v29  ;;  %v1652_v34 = vrot.slane %v1913_v21, %v2213_v29 }
 0x2ec   : > { %1260 = vst [vmem:[#allocation2 + $0x70] sm:$0xff] %v1258_v26  ;;  %1261 = vst [vmem:[#allocation2 + $0x80] sm:$0xff] %v1259_v30  ;;  %v1221_v48 = vpop.permute.xlu0 %1220  ;;  %1405 = vmatprep.subr.mxu1 %v1259_v30  ;;  %v1578_v60 = vadd.f32 %v1574_v5, %v1563_v46  ;;  %v1185_v9 = vrot.slane %v1180_v57, %v2211_v28  ;;  %v1189_v10 = vrot.slane %v1180_v57, %v2213_v29 }
 0x2ed   : > { %v1222_v43 = vsel %vm613_vm8, %v1219_v31, %v1221_v48  ;;  %v1223_v44 = vsel %vm613_vm8, %v1221_v48, %v1219_v31  ;;  %1406 = vmatpush1.msra.mxu1 %v1258_v26  ;;  %v1557_v12 = vmax.f32 %v1531_v58, %v1555_v52  ;;  %v1607_v25 = vcombine.low %v1603_v13, %v1604_v14 }
 0x2ee   : > { %v1236_v45 = vmul.f32 %v1229_v32, %v1223_v44  ;;  %v1237_v47 = vmul.f32 %v1233_v33, %v1222_v43  ;;  %v1197_v49 = vpop.permute.xlu1 %1196  ;;  %v1581_v59 = vcombine.low %v1577_v53, %v1578_v60  ;;  %v1648_v33 = vrot.slane %v1913_v21, %v2211_v28 }
 0x2f0   : > { %1238 = vst [vmem:[#allocation2 + $0x20] sm:$0xff] %v1236_v45  ;;  %1239 = vst [vmem:[#allocation2 + $0x8] sm:$0xff] %v1237_v47  ;;  %v1199_v62 = vpop.permute.xlu0 %1198  ;;  %1407 = vmatprep.subr.mxu1 %v1237_v47  ;;  %v1583_v4 = vmax.f32 %v1557_v12, %v1581_v59 }
 0x2f1   : > { %v1200_v2 = vsel %vm583_vm7, %v1197_v49, %v1199_v62  ;;  %v1201_v3 = vsel %vm583_vm7, %v1199_v62, %v1197_v49  ;;  %1408 = vmatpush1.msra.mxu1 %v1236_v45 }
 0x2f2   : > { %v1214_v6 = vmul.f32 %v1207_v50, %v1201_v3  ;;  %v1215_v7 = vmul.f32 %v1211_v51, %v1200_v2  ;;  %v1175_v8 = vpop.permute.xlu1 %1174  ;;  %v1609_v38 = vmax.f32 %v1583_v4, %v1607_v25 }
 0x2f4   : > { %1216 = vst [vmem:[#allocation2 + $0x78] sm:$0xff] %v1214_v6  ;;  %1217 = vst [vmem:[#allocation2 + $0x58] sm:$0xff] %v1215_v7  ;;  %v1177_v61 = vpop.permute.xlu0 %1176  ;;  %1409 = vmatprep.subr.mxu1 %v1215_v7 }
 0x2f5   : > { %v1178_v15 = vsel %vm560_vm9, %v1175_v8, %v1177_v61  ;;  %v1179_v54 = vsel %vm560_vm9, %v1177_v61, %v1175_v8  ;;  %1410 = vmatpush1.msra.mxu1 %v1214_v6 }
 0x2f6   : > { %v1192_v55 = vmul.f32 %v1185_v9, %v1179_v54  ;;  %v1193_v16 = vmul.f32 %v1189_v10, %v1178_v15  ;;  %v1611_v19 = vpop.permute.xlu1 %1610 }
 0x2f8   : > { %1194 = vst [vmem:[#allocation2] sm:$0xff] %v1192_v55  ;;  %1195 = vst [vmem:[#allocation2 + $0x38] sm:$0xff] %v1193_v16  ;;  %v1613_v24 = vpop.permute.xlu0 %1612  ;;  %1411 = vmatprep.subr.mxu1 %v1193_v16 }
 0x2f9   : > { %v1614_v26 = vsel %vm723_vm2, %v1611_v19, %v1613_v24  ;;  %v1615_v30 = vsel %vm723_vm2, %v1613_v24, %v1611_v19  ;;  %1412 = vmatpush1.msra.mxu1 %v1192_v55 }
 0x2fa   : > { %v1629_v31 = vadd.f32 %v1622_v17, %v1614_v26  ;;  %v1630_v32 = vadd.f32 %v1626_v18, %v1615_v30  ;;  %v1637_v5 = vpop.permute.xlu1 %1636  ;;  %1906 = vmatmul.mubr.msk.f32.vlgmr.msra.gmra.mxu1 %vm1377_vm11, %v1352_v22 }
 0x2fb   : > { %1742 = vmatprep.mubr.f32.mxu1 %v1984_v0  ;;  %v1662_v0 = vld [vmem:[%s2671_s11] sm:$0xf] }
 0x2fc   : > { %v1633_v56 = vcombine.low %v1629_v31, %v1630_v32  ;;  %v1639_v35 = vpop.permute.xlu0 %1638 }
 0x2fd   : > { %v1640_v36 = vsel %vm753_vm3, %v1637_v5, %v1639_v35  ;;  %v1641_v37 = vsel %vm753_vm3, %v1639_v35, %v1637_v5 }
 0x2fe   : > { %v1655_v39 = vadd.f32 %v1648_v33, %v1640_v36  ;;  %v1656_v48 = vadd.f32 %v1652_v34, %v1641_v37  ;;  %v1635_v42 = vmax.f32 %v1609_v38, %v1633_v56 }
 0x300   : > { %v1659_v28 = vcombine.low %v1655_v39, %v1656_v48 }
 0x302   : > { %v1661_v29 = vmax.f32 %v1635_v42, %v1659_v28 }
 0x304   : > { %v1670_v46 = vcombine.high %v1661_v29, %v1661_v29 }
 0x306   : > { %1914 = vmatprep.subr.msk.mxu1 %vm462_vm0, %v1670_v46 }
 0x307   : > { %v788_v43 = vpop.permute.xlu1 %787  ;;  %1915 = vmatpush1.msk.msra.mxu1 %vm462_vm0, %v1661_v29 }
 0x308   : > { %v867_v27 = vadd.f32 %v2382_v40, %v788_v43  ;;  %v869_v44 = vadd.f32 %v2384_v41, %v788_v43  ;;  %1916 = vmatmul.mubr.msk.f32.vlgmr.msra.gmra.mxu1 %vm455_vm1, %v1662_v0 }
 0x309   : > { %v1375_v51 = vpop.permute.xlu0 %1374 }
 0x30a   : > { %v871_v45 = vmax.f32 %v867_v27, 0.0  ;;  %v872_v47 = vmax.f32 %v869_v44, 0.0 }
 0x30b   : > { %v1667_v62 = vpop.permute.xlu1 %1666 }
 0x30c   : > { %v1755_v49 = vrot.slane %v871_v45, 4  ;;  %v1756_v50 = vrot.slane %v872_v47, 4 }
 0x30e   : > { %1759 = vst [vmem:[%s2126_s21 + $0x10] ss:$-12 sps:$4 sm:$0xff] %v1755_v49   ;;  %1760 = vst [vmem:[%s2126_s21 + $0x18] ss:$-12 sps:$4 sm:$0xff] %v1756_v50  }
 0x315   : > { %v1803_v9 = vld [vmem:[%s2126_s21] sm:$0xff] (%p2089_p4)  ;;  %v1805_v10 = vld [vmem:[%s2126_s21 + $0x8] sm:$0xff] (%p2089_p4) }
 0x316   : > { %1804 = vst [vmem:[%s1790_s27] sm:$0xff] (%p2089_p4), %v1803_v9  ;;  %1806 = vst [vmem:[%s1790_s27 + $0x8] sm:$0xff] (%p2089_p4), %v1805_v10 }
 0x3ba   : > { %v1447_v20 = vpop.f32.mrf.mxu1 }
 0x3bb   : > { %v1448_v23 = vadd.f32 %v1447_v20, %v1375_v51 }
 0x3bc   : > { %v1449_v57 = vpop.f32.mrf.mxu1 }
 0x3bd   : > { %v1452_v58 = vmax.f32 %v1448_v23, 0.0  ;;  %v1450_v52 = vadd.f32 %v1449_v57, %v1375_v51 }
 0x3bf   : > { %v1765_v40 = vrot.slane %v1452_v58, 4  ;;  %v1453_v41 = vmax.f32 %v1450_v52, 0.0 }
 0x3c1   : > { %1769 = vst [vmem:[%s2126_s21 + $0x20] ss:$-12 sps:$4 sm:$0xff] %v1765_v40   ;;  %v1766_v53 = vrot.slane %v1453_v41, 4 }
 0x3c3   : > { %1770 = vst [vmem:[%s2126_s21 + $0x28] ss:$-12 sps:$4 sm:$0xff] %v1766_v53  }
 0x3c8   : > { %v1744_v60 = vpop.f32.mrf.mxu1  ;;  %v1807_v11 = vld [vmem:[%s2126_s21 + $0x10] sm:$0xff] (%p2089_p4) }
 0x3c9   : > { %v1745_v63 = vadd.f32 %v1744_v60, %v1667_v62  ;;  %1808 = vst [vmem:[%s1790_s27 + $0x20] sm:$0xff] (%p2089_p4), %v1807_v11 }
 0x3ca   : > { %v1746_v1 = vpop.f32.mrf.mxu1  ;;  %v1809_v12 = vld [vmem:[%s2126_s21 + $0x18] sm:$0xff] (%p2089_p4) }
 0x3cb   : > { %v1749_v2 = vmax.f32 %v1745_v63, 0.0  ;;  %v1747_v3 = vadd.f32 %v1746_v1, %v1667_v62  ;;  %1810 = vst [vmem:[%s1790_s27 + $0x28] sm:$0xff] (%p2089_p4), %v1809_v12 }
 0x3cd   : > { %v1775_v6 = vrot.slane %v1749_v2, 4  ;;  %v1750_v7 = vmax.f32 %v1747_v3, 0.0  ;;  %1787 = sbr.rel (!%p2089_p4) target bundleno = 986 (0x3da), region = 76 }
 0x3cf   : > { %1779 = vst [vmem:[%s2126_s21 + $0x20] sm:$0xf0] %v1775_v6  ;;  %v1776_v8 = vrot.slane %v1750_v7, 4 }
 0x3d1   : > { %1780 = vst [vmem:[%s2126_s21 + $0x28] sm:$0xf0] %v1776_v8 }
 0x3d6   : > { %v1811_v59 = vld [vmem:[%s2126_s21 + $0x20] sm:$0xff] }
 0x3d7   : > { %1812 = vst [vmem:[%s1790_s27 + $0x40] sm:$0xff] %v1811_v59 }
 0x3d8   : > { %v1813_v61 = vld [vmem:[%s2126_s21 + $0x28] sm:$0xff] }
 0x3d9   : > { %1814 = vst [vmem:[%s1790_s27 + $0x48] sm:$0xff] %v1813_v61 }
 0x3da PF: > { %p20_p8 = scmp.ge.s32.totalorder %s2079_s29, 4   ;;  %s2678_s25 = smov %s1978_s26 }
 0x3db   : > { %s2679_s26 = smov %s2087_s15  ;;  %s2680_s27 = smov %s2079_s29 }
 0x3dc   :  { %22 = sbr.rel (!%p20_p8) target bundleno = 2 (0x2), region = 139 }

</bundles_post_ra>
